<compile_context>
chip_gen: v5e
topology: v5e:2x2
jax: 0.10.0
libtpu: 0.0.40
codegen_flags: <defaults>
</compile_context>

<pallas_src>
import functools

import jax
import jax.numpy as jnp
from jax import lax
from jax.experimental import pallas as pl
from jax.experimental.pallas import tpu as pltpu

EPS = 1e-5
LANE = 128


def _ru(x, m):
    return (x + m - 1) // m * m


def _cdiv(a, b):
    return -(-a // b)


def _vmem_budget():
    # v5e/v6e: 128 MiB VMEM per core, v7x: 64 MiB per TC. Keep headroom.
    try:
        cap = int(pltpu.get_tpu_info().vmem_capacity_bytes)
    except Exception:
        cap = 64 * 1024 * 1024
    return int(min(cap * 3 // 4, 100 * 1024 * 1024))


VMEM_LIMIT = _vmem_budget()
# With bf16 operands, 1024-row tiles fit on 128 MiB parts; keep 512 on v7x.
TILE_M_MAX = 1024 if VMEM_LIMIT >= 80 * 1024 * 1024 else 512


def _cparams():
    return pltpu.CompilerParams(dimension_semantics=("parallel",),
                                vmem_limit_bytes=VMEM_LIMIT)


def _row_tiling(m):
    # Balanced tiles: >= 2 grid steps (v7x megacore) and no mostly-padding tail.
    nt = max(2, _cdiv(m, TILE_M_MAX))
    tile = _ru(_cdiv(m, nt), 8)
    return tile, nt, tile * nt


def _pad_vec(v, n):
    return jnp.pad(v, (0, n - v.shape[0]))


# ----------------------------- Pallas kernels -----------------------------

def _mm_stats_kernel(p_ref, w_ref, y_ref, stat_ref):
    # conv-as-matmul: bf16 operands, f32 MXU accumulation; bf16 activation out,
    # f32 per-tile partial BN statistics (sum, sum of squares).
    y = jnp.dot(p_ref[...], w_ref[...], preferred_element_type=jnp.float32)
    y_ref[...] = y.astype(y_ref.dtype)
    stat_ref[0, 0:1, :] = jnp.sum(y, axis=0, keepdims=True)
    stat_ref[0, 1:2, :] = jnp.sum(y * y, axis=0, keepdims=True)


def _bn_act_kernel(y_ref, sc_ref, o_ref):
    # relu(y*a + c); math in f32, bf16 in/out.
    y = y_ref[...].astype(jnp.float32)
    o_ref[...] = jnp.maximum(y * sc_ref[0:1, :] + sc_ref[1:2, :], 0.0
                             ).astype(o_ref.dtype)


def _bn_add_kernel(y_ref, t_ref, sc_ref, o_ref):
    # relu(y*a + c + t*a_s + c_s): identity shortcut uses (a_s, c_s) = (1, 0),
    # projection shortcut uses its own folded BN scale/shift.
    y = y_ref[...].astype(jnp.float32)
    t = t_ref[...].astype(jnp.float32)
    z = y * sc_ref[0:1, :] + sc_ref[1:2, :] + t * sc_ref[2:3, :] + sc_ref[3:4, :]
    o_ref[...] = jnp.maximum(z, 0.0).astype(o_ref.dtype)


def _bn_add_pool_kernel(y_ref, t_ref, sc_ref, o_ref):
    # Final block: BN + shortcut-add + ReLU fused with global average pooling.
    y = y_ref[0].astype(jnp.float32)
    t = t_ref[0].astype(jnp.float32)
    z = y * sc_ref[0:1, :] + sc_ref[1:2, :] + t * sc_ref[2:3, :] + sc_ref[3:4, :]
    o_ref[0] = jnp.mean(jnp.maximum(z, 0.0), axis=0, keepdims=True)


def _maxpool_kernel(ho, wo, x00_ref, x01_ref, x10_ref, x11_ref, o_ref):
    # 3x3/s2 max over 9 taps; each tap is a contiguous slice of one of the four
    # parity phases -> no strided access and no 9x tap stack in HBM.
    phases = ((x00_ref, x01_ref), (x10_ref, x11_ref))
    acc = None
    for kh in range(3):
        for kw in range(3):
            ref = phases[kh % 2][kw % 2]
            tap = ref[0, kh // 2:kh // 2 + ho, kw // 2:kw // 2 + wo, :]
            tap = tap.astype(jnp.float32)
            acc = tap if acc is None else jnp.maximum(acc, tap)
    o_ref[0] = acc.astype(o_ref.dtype)


# --------------------------- im2col / weight glue ---------------------------

def _im2col(x, k, stride, pad):
    # [N,H,W,C] (bf16) -> ([N*Ho*Wo, k*k*C], Ho, Wo); rows tap-major, ch-minor.
    N, H, W, C = x.shape
    Ho = (H + 2 * pad - k) // stride + 1
    Wo = (W + 2 * pad - k) // stride + 1
    xp = jnp.pad(x, ((0, 0), (pad, pad), (pad, pad), (0, 0))) if pad else x
    cols = []
    for kh in range(k):
        for kw in range(k):
            cols.append(lax.slice(
                xp, (0, kh, kw, 0),
                (N, kh + (Ho - 1) * stride + 1, kw + (Wo - 1) * stride + 1, C),
                (1, stride, stride, 1)))
    patches = jnp.stack(cols, axis=3)                   # [N,Ho,Wo,k*k,C]
    return patches.reshape(N * Ho * Wo, k * k * C), Ho, Wo


def _w_to_mat(w, cin_p, cout_p):
    # [Cout,Cin,kh,kw] -> bf16 [kh*kw*cin_p, cout_p]; matches _im2col layout.
    cout, cin, kh, kw = w.shape
    wp = jnp.pad(w, ((0, cout_p - cout), (0, cin_p - cin), (0, 0), (0, 0)))
    return jnp.transpose(wp, (2, 3, 1, 0)).reshape(kh * kw * cin_p, cout_p
                                                   ).astype(jnp.bfloat16)


# --------------------------- pallas_call wrappers ---------------------------

def _conv_mm(x_nhwc, w, k, stride, pad, cout_p):
    """Conv as gridded bf16 matmul. Returns (y[Mp,Cp] bf16, stats, M, Ho, Wo, tile)."""
    N, H, W, C = x_nhwc.shape
    patches, Ho, Wo = _im2col(x_nhwc.astype(jnp.bfloat16), k, stride, pad)
    M = N * Ho * Wo
    tile, nt, Mp = _row_tiling(M)
    if Mp != M:
        patches = jnp.pad(patches, ((0, Mp - M), (0, 0)))   # zero rows: no stat pollution
    wmat = _w_to_mat(w, C, cout_p)
    K = patches.shape[1]
    y, stats = pl.pallas_call(
        _mm_stats_kernel,
        out_shape=(jax.ShapeDtypeStruct((Mp, cout_p), jnp.bfloat16),
                   jax.ShapeDtypeStruct((nt, 2, cout_p), jnp.float32)),
        grid_spec=pltpu.PrefetchScalarGridSpec(
            num_scalar_prefetch=0,
            grid=(nt,),
            in_specs=[pl.BlockSpec((tile, K), lambda i: (i, 0)),
                      pl.BlockSpec((K, cout_p), lambda i: (0, 0))],
            out_specs=(pl.BlockSpec((tile, cout_p), lambda i: (i, 0)),
                       pl.BlockSpec((1, 2, cout_p), lambda i: (i, 0, 0)))),
        compiler_params=_cparams(),
    )(patches, wmat)
    return y, stats, M, Ho, Wo, tile


def _fold_bn(stats, m_real, gamma, beta, cp):
    # Exact batch stats from per-tile f32 partials; fold BN into scale/shift.
    # TODO(synk): per-tile-centered (Welford) partials would avoid the
    # E[y^2]-E[y]^2 cancellation for extreme |mean|/std ratios.
    tot = jnp.sum(stats, axis=0)                          # (2, Cp)
    mean = tot[0] / m_real
    var = jnp.maximum(tot[1] / m_real - mean * mean, 0.0)
    a = _pad_vec(gamma, cp) * lax.rsqrt(var + EPS)
    c = _pad_vec(beta, cp) - mean * a
    return jnp.stack([a, c])                              # (2, Cp) f32


def _bn_act(y, sc, tile):
    Mp, Cp = y.shape
    nt = Mp // tile
    return pl.pallas_call(
        _bn_act_kernel,
        out_shape=jax.ShapeDtypeStruct((Mp, Cp), jnp.bfloat16),
        grid_spec=pltpu.PrefetchScalarGridSpec(
            num_scalar_prefetch=0, grid=(nt,),
            in_specs=[pl.BlockSpec((tile, Cp), lambda i: (i, 0)),
                      pl.BlockSpec((2, Cp), lambda i: (0, 0))],
            out_specs=pl.BlockSpec((tile, Cp), lambda i: (i, 0))),
        compiler_params=_cparams(),
    )(y, sc)


def _bn_add(y, t, sc, tile):
    Mp, Cp = y.shape
    nt = Mp // tile
    return pl.pallas_call(
        _bn_add_kernel,
        out_shape=jax.ShapeDtypeStruct((Mp, Cp), jnp.bfloat16),
        grid_spec=pltpu.PrefetchScalarGridSpec(
            num_scalar_prefetch=0, grid=(nt,),
            in_specs=[pl.BlockSpec((tile, Cp), lambda i: (i, 0)),
                      pl.BlockSpec((tile, Cp), lambda i: (i, 0)),
                      pl.BlockSpec((4, Cp), lambda i: (0, 0))],
            out_specs=pl.BlockSpec((tile, Cp), lambda i: (i, 0))),
        compiler_params=_cparams(),
    )(y, t, sc)


def _bn_add_pool(y2d, t2d, sc, n, hw, cp):
    y = y2d.reshape(n, hw, cp)
    t = t2d.reshape(n, hw, cp)
    out = pl.pallas_call(
        _bn_add_pool_kernel,
        out_shape=jax.ShapeDtypeStruct((n, 1, cp), jnp.float32),
        grid_spec=pltpu.PrefetchScalarGridSpec(
            num_scalar_prefetch=0, grid=(n,),
            in_specs=[pl.BlockSpec((1, hw, cp), lambda i: (i, 0, 0)),
                      pl.BlockSpec((1, hw, cp), lambda i: (i, 0, 0)),
                      pl.BlockSpec((4, cp), lambda i: (0, 0))],
            out_specs=pl.BlockSpec((1, 1, cp), lambda i: (i, 0, 0))),
        compiler_params=_cparams(),
    )(y, t, sc)
    return out[:, 0, :]                                   # (N, Cp) f32


def _maxpool(x_nhwc):
    # 3x3/s2/p1 max pool via 4 parity phases (post-ReLU values are >= 0, so zero
    # padding is equivalent to PyTorch's -inf padding for the max).
    N, H, W, Cp = x_nhwc.shape
    Ho = (H - 1) // 2 + 1
    Wo = (W - 1) // 2 + 1
    Hp, Wp = 2 * Ho + 2, 2 * Wo + 2
    xp = jnp.pad(x_nhwc, ((0, 0), (1, Hp - H - 1), (1, Wp - W - 1), (0, 0)))
    phases = [xp[:, p::2, q::2, :] for p in range(2) for q in range(2)]
    hph, wph = Ho + 1, Wo + 1
    in_spec = pl.BlockSpec((1, hph, wph, Cp), lambda i: (i, 0, 0, 0))
    out = pl.pallas_call(
        functools.partial(_maxpool_kernel, Ho, Wo),
        out_shape=jax.ShapeDtypeStruct((N, Ho, Wo, Cp), jnp.bfloat16),
        grid_spec=pltpu.PrefetchScalarGridSpec(
            num_scalar_prefetch=0, grid=(N,),
            in_specs=[in_spec, in_spec, in_spec, in_spec],
            out_specs=pl.BlockSpec((1, Ho, Wo, Cp), lambda i: (i, 0, 0, 0))),
        compiler_params=_cparams(),
    )(*phases)
    return out


# ------------------------------ model forward -------------------------------

def _resnet_block(x_nhwc, bp, is_last):
    N, H, W, cp_in = x_nhwc.shape
    cin, cout = bp['cin'], bp['cout']
    cp_out = _ru(cout, LANE)

    # conv1 -> bn1 -> relu   (conv bias dropped: cancelled by batch-stat BN)
    y1, st1, M, Ho, Wo, tile = _conv_mm(x_nhwc, bp['w1'], 3, 1, 1, cp_out)
    sc1 = _fold_bn(st1, M, bp['g1'], bp['be1'], cp_out)
    o1 = _bn_act(y1, sc1, tile)
    if o1.shape[0] != M:
        o1 = o1[:M]
    o1 = o1.reshape(N, Ho, Wo, cp_out)

    # conv2 -> bn2 (+ shortcut) -> relu  [fused with avgpool for the last block]
    y2, st2, M2, _, _, tile2 = _conv_mm(o1, bp['w2'], 3, 1, 1, cp_out)
    sc2 = _fold_bn(st2, M2, bp['g2'], bp['be2'], cp_out)

    if cin != cout:
        ys, sts, Ms, _, _, _ = _conv_mm(x_nhwc, bp['ws'], 1, 1, 0, cp_out)
        scs = _fold_bn(sts, Ms, bp['gs'], bp['bes'], cp_out)
        t = ys
        sc = jnp.concatenate([sc2, scs], axis=0)
    else:
        t = x_nhwc.reshape(M2, cp_in)
        if y2.shape[0] != M2:
            t = jnp.pad(t, ((0, y2.shape[0] - M2), (0, 0)))
        sc = jnp.concatenate(
            [sc2, jnp.stack([jnp.ones((cp_out,), jnp.float32),
                             jnp.zeros((cp_out,), jnp.float32)])], axis=0)

    if is_last:
        if y2.shape[0] != M2:
            y2, t = y2[:M2], t[:M2]
        return _bn_add_pool(y2, t, sc, N, Ho * Wo, cp_out)      # (N, cp_out)

    out = _bn_add(y2, t, sc, tile2)
    if out.shape[0] != M2:
        out = out[:M2]
    return out.reshape(N, Ho, Wo, cp_out)


def resnet_scaler_forward(x_nchw, p):
    N = x_nchw.shape[0]
    base = p['g0'].shape[0]
    base_p = _ru(base, LANE)
    x = jnp.transpose(x_nchw, (0, 2, 3, 1))               # NHWC

    # stem: conv7x7/s2 -> BN -> ReLU -> maxpool3x3/s2
    y, st, M, Ho, Wo, tile = _conv_mm(x, p['w0'], 7, 2, 3, base_p)
    sc = _fold_bn(st, M, p['g0'], p['be0'], base_p)
    o = _bn_act(y, sc, tile)
    if o.shape[0] != M:
        o = o[:M]
    o = _maxpool(o.reshape(N, Ho, Wo, base_p))

    nb = len(p['blocks'])
    if nb == 0:
        # Corner case: pool the stem activation directly (already >= 0),
        # reusing the fused kernel with an identity transform.
        _, Hh, Ww, Cp = o.shape
        o2d = o.reshape(N * Hh * Ww, Cp)
        sc0 = jnp.stack([jnp.ones((Cp,), jnp.float32),
                         jnp.zeros((Cp,), jnp.float32),
                         jnp.zeros((Cp,), jnp.float32),
                         jnp.zeros((Cp,), jnp.float32)])
        pooled = _bn_add_pool(o2d, o2d, sc0, N, Hh * Ww, Cp)
        c_final = base
    else:
        pooled = None
        for i, bp in enumerate(p['blocks']):
            if i < nb - 1:
                o = _resnet_block(o, bp, is_last=False)
            else:
                pooled = _resnet_block(o, bp, is_last=True)
        c_final = p['blocks'][-1]['cout']

    return pooled[:, :c_final].reshape(N, c_final, 1, 1)


# --------------------------- params & reference -----------------------------

def init_params(key, in_channels, num_blocks, base_channels):
    keys = iter(jax.random.split(key, 4 + 12 * max(num_blocks, 1)))

    def nrm(shape, s=0.1):
        return s * jax.random.normal(next(keys), shape, jnp.float32)

    p = {
        'w0': nrm((base_channels, in_channels, 7, 7)),
        'b0': nrm((base_channels,)),
        'g0': 1.0 + nrm((base_channels,)),
        'be0': nrm((base_channels,)),
        'blocks': [],
    }
    cin = base_channels
    for i in range(num_blocks):
        cout = base_channels * 2 ** min(i, 3)
        bp = {
            'cin': cin, 'cout': cout,
            'w1': nrm((cout, cin, 3, 3)), 'b1': nrm((cout,)),
            'g1': 1.0 + nrm((cout,)), 'be1': nrm((cout,)),
            'w2': nrm((cout, cout, 3, 3)), 'b2': nrm((cout,)),
            'g2': 1.0 + nrm((cout,)), 'be2': nrm((cout,)),
        }
        if cin != cout:
            bp.update({'ws': nrm((cout, cin, 1, 1)), 'bs': nrm((cout,)),
                       'gs': 1.0 + nrm((cout,)), 'bes': nrm((cout,))})
        p['blocks'].append(bp)
        cin = cout
    return p


def _ref_conv(x, w, b, stride, pad):
    y = lax.conv_general_dilated(x, w, (stride, stride), ((pad, pad), (pad, pad)),
                                 dimension_numbers=('NCHW', 'OIHW', 'NCHW'))
    return y + b.reshape(1, -1, 1, 1)


def _ref_bn(y, g, be):
    m = jnp.mean(y, axis=(0, 2, 3), keepdims=True)
    v = jnp.mean((y - m) ** 2, axis=(0, 2, 3), keepdims=True)
    return (y - m) * lax.rsqrt(v + EPS) * g.reshape(1, -1, 1, 1) + be.reshape(1, -1, 1, 1)


def _ref_block(x, bp):
    if bp['cin'] != bp['cout']:
        ident = _ref_bn(_ref_conv(x, bp['ws'], bp['bs'], 1, 0), bp['gs'], bp['bes'])
    else:
        ident = x
    out = jnp.maximum(_ref_bn(_ref_conv(x, bp['w1'], bp['b1'], 1, 1),
                              bp['g1'], bp['be1']), 0.0)
    out = _ref_bn(_ref_conv(out, bp['w2'], bp['b2'], 1, 1), bp['g2'], bp['be2'])
    return jnp.maximum(out + ident, 0.0)


def ref_forward(x, p):
    y = jnp.maximum(_ref_bn(_ref_conv(x, p['w0'], p['b0'], 2, 3), p['g0'], p['be0']), 0.0)
    y = lax.reduce_window(y, -jnp.inf, lax.max, (1, 1, 3, 3), (1, 1, 2, 2),
                          ((0, 0), (0, 0), (1, 1), (1, 1)))
    for bp in p['blocks']:
        y = _ref_block(y, bp)
    return jnp.mean(y, axis=(2, 3), keepdims=True)


# --------------------------------- main -------------------------------------

if __name__ == "__main__":
    key = jax.random.PRNGKey(0)
    kx, kp = jax.random.split(key)
    N, CIN, H, W = 2, 4, 16, 16
    NUM_BLOCKS, BASE = 2, 8      # block0: 8->8 (identity), block1: 8->16 (projection)

    x = jax.random.normal(kx, (N, CIN, H, W), jnp.float32)
    params = init_params(kp, CIN, NUM_BLOCKS, BASE)

    fwd = jax.jit(lambda xx: resnet_scaler_forward(xx, params))
    out = jax.block_until_ready(fwd(x))

    ref = ref_forward(x, params)
    c_final = params['blocks'][-1]['cout']
    assert out.shape == (N, c_final, 1, 1), out.shape
    err = float(jnp.max(jnp.abs(out - ref)))
    assert jnp.allclose(out, ref, atol=3e-2, rtol=3e-2), err
    print("KERNEL_OK")
</pallas_src>

<mosaic_0001>
module attributes {stable_mosaic.version = 11 : i64} {
  func.func @_mm_stats_kernel(%arg0: i32, %arg1: memref<64x196xbf16, #tpu.memory_space<vmem>>, %arg2: memref<196x128xbf16, #tpu.memory_space<vmem>>, %arg3: memref<64x128xbf16, #tpu.memory_space<vmem>>, %arg4: memref<1x2x128xf32, #tpu.memory_space<vmem>>) attributes {dimension_semantics = [#tpu.dimension_semantics<parallel>], iteration_bounds = array<i64: 2>, scalar_prefetch = 0 : i64, scratch_operands = 0 : i64, tpu.core_type = #tpu.core_type<tc>, window_params = [{transform_indices = @transform_0, window_bounds = array<i64: 64, 196>}, {pipeline_mode = #tpu.pipeline_mode<synchronous>, transform_indices = @transform_1, window_bounds = array<i64: 196, 128>}, {transform_indices = @transform_2, window_bounds = array<i64: 64, 128>}, {transform_indices = @transform_3, window_bounds = array<i64: 1, 2, 128>}]} {
    %c0 = arith.constant 0 : index
    %c0_0 = arith.constant 0 : index
    %0 = vector.load %arg1[%c0, %c0_0] : memref<64x196xbf16, #tpu.memory_space<vmem>>, vector<64x196xbf16>
    %c0_1 = arith.constant 0 : index
    %c0_2 = arith.constant 0 : index
    %1 = vector.load %arg2[%c0_1, %c0_2] : memref<196x128xbf16, #tpu.memory_space<vmem>>, vector<196x128xbf16>
    %cst = arith.constant dense<0.000000e+00> : vector<64x128xf32>
    %2 = tpu.matmul %0, %1, %cst {dimension_numbers = #tpu.dot_dimension_numbers<[1], [0], [0], [1], [0, 0, 1, 1], [], []>} : vector<64x196xbf16>, vector<196x128xbf16>, vector<64x128xf32> -> vector<64x128xf32>
    %3 = arith.truncf %2 : vector<64x128xf32> to vector<64x128xbf16>
    %c0_3 = arith.constant 0 : index
    %c0_4 = arith.constant 0 : index
    %4 = vector.load %arg3[%c0_3, %c0_4] : memref<64x128xbf16, #tpu.memory_space<vmem>>, vector<64x128xbf16>
    tpu.vector_store %arg3[%c0_3, %c0_4], %3 {strides = array<i32>} : memref<64x128xbf16, #tpu.memory_space<vmem>>, vector<64x128xbf16>,
    %cst_5 = arith.constant dense<0.000000e+00> : vector<128xf32>
    %5 = vector.multi_reduction <add>, %2, %cst_5 [0] : vector<64x128xf32> to vector<128xf32>
    %6 = vector.shape_cast %5 : vector<128xf32> to vector<1x128xf32>
    %c0_6 = arith.constant 0 : index
    %c0_7 = arith.constant 0 : index
    %c0_8 = arith.constant 0 : index
    %7 = vector.load %arg4[%c0_6, %c0_7, %c0_8] : memref<1x2x128xf32, #tpu.memory_space<vmem>>, vector<1x1x128xf32>
    %8 = vector.shape_cast %7 : vector<1x1x128xf32> to vector<1x128xf32>
    %9 = vector.shape_cast %6 : vector<1x128xf32> to vector<1x1x128xf32>
    tpu.vector_store %arg4[%c0_6, %c0_7, %c0_8], %9 {strides = array<i32>} : memref<1x2x128xf32, #tpu.memory_space<vmem>>, vector<1x1x128xf32>,
    %10 = arith.mulf %2, %2 : vector<64x128xf32>
    %cst_9 = arith.constant dense<0.000000e+00> : vector<128xf32>
    %11 = vector.multi_reduction <add>, %10, %cst_9 [0] : vector<64x128xf32> to vector<128xf32>
    %12 = vector.shape_cast %11 : vector<128xf32> to vector<1x128xf32>
    %c0_10 = arith.constant 0 : index
    %c1 = arith.constant 1 : index
    %c0_11 = arith.constant 0 : index
    %13 = vector.load %arg4[%c0_10, %c1, %c0_11] : memref<1x2x128xf32, #tpu.memory_space<vmem>>, vector<1x1x128xf32>
    %14 = vector.shape_cast %13 : vector<1x1x128xf32> to vector<1x128xf32>
    %15 = vector.shape_cast %12 : vector<1x128xf32> to vector<1x1x128xf32>
    tpu.vector_store %arg4[%c0_10, %c1, %c0_11], %15 {strides = array<i32>} : memref<1x2x128xf32, #tpu.memory_space<vmem>>, vector<1x1x128xf32>,
    return
  }
  func.func @transform_0(%arg0: i32) -> (i32, i32) {
    %c0_i32 = arith.constant 0 : i32
    %c0_i32_0 = arith.constant 0 : i32
    return %arg0, %c0_i32 : i32, i32
  }
  func.func @transform_1(%arg0: i32) -> (i32, i32) {
    %c0_i32 = arith.constant 0 : i32
    %c0_i32_0 = arith.constant 0 : i32
    %c0_i32_1 = arith.constant 0 : i32
    return %c0_i32, %c0_i32_0 : i32, i32
  }
  func.func @transform_2(%arg0: i32) -> (i32, i32) {
    %c0_i32 = arith.constant 0 : i32
    %c0_i32_0 = arith.constant 0 : i32
    return %arg0, %c0_i32 : i32, i32
  }
  func.func @transform_3(%arg0: i32) -> (i32, i32, i32) {
    %c0_i32 = arith.constant 0 : i32
    %c0_i32_0 = arith.constant 0 : i32
    %c0_i32_1 = arith.constant 0 : i32
    return %arg0, %c0_i32, %c0_i32_0 : i32, i32, i32
  }
}

module attributes {stable_mosaic.version = 11 : i64} {
  func.func @_bn_act_kernel(%arg0: i32, %arg1: memref<64x128xbf16, #tpu.memory_space<vmem>>, %arg2: memref<2x128xf32, #tpu.memory_space<vmem>>, %arg3: memref<64x128xbf16, #tpu.memory_space<vmem>>) attributes {dimension_semantics = [#tpu.dimension_semantics<parallel>], iteration_bounds = array<i64: 2>, scalar_prefetch = 0 : i64, scratch_operands = 0 : i64, tpu.core_type = #tpu.core_type<tc>, window_params = [{transform_indices = @transform_0, window_bounds = array<i64: 64, 128>}, {pipeline_mode = #tpu.pipeline_mode<synchronous>, transform_indices = @transform_1, window_bounds = array<i64: 2, 128>}, {transform_indices = @transform_2, window_bounds = array<i64: 64, 128>}]} {
    %c0 = arith.constant 0 : index
    %c0_0 = arith.constant 0 : index
    %0 = vector.load %arg1[%c0, %c0_0] : memref<64x128xbf16, #tpu.memory_space<vmem>>, vector<64x128xbf16>
    %1 = arith.extf %0 : vector<64x128xbf16> to vector<64x128xf32>
    %c0_1 = arith.constant 0 : index
    %c0_2 = arith.constant 0 : index
    %2 = vector.load %arg2[%c0_1, %c0_2] : memref<2x128xf32, #tpu.memory_space<vmem>>, vector<1x128xf32>
    %3 = vector.broadcast %2 : vector<1x128xf32> to vector<64x128xf32>
    %4 = arith.mulf %1, %3 : vector<64x128xf32>
    %c1 = arith.constant 1 : index
    %c0_3 = arith.constant 0 : index
    %5 = vector.load %arg2[%c1, %c0_3] : memref<2x128xf32, #tpu.memory_space<vmem>>, vector<1x128xf32>
    %6 = vector.broadcast %5 : vector<1x128xf32> to vector<64x128xf32>
    %7 = arith.addf %4, %6 : vector<64x128xf32>
    %cst = arith.constant 0.000000e+00 : f32
    %8 = vector.broadcast %cst : f32 to vector<64x128xf32>
    %9 = arith.maximumf %7, %8 : vector<64x128xf32>
    %10 = arith.truncf %9 : vector<64x128xf32> to vector<64x128xbf16>
    %c0_4 = arith.constant 0 : index
    %c0_5 = arith.constant 0 : index
    %11 = vector.load %arg3[%c0_4, %c0_5] : memref<64x128xbf16, #tpu.memory_space<vmem>>, vector<64x128xbf16>
    tpu.vector_store %arg3[%c0_4, %c0_5], %10 {strides = array<i32>} : memref<64x128xbf16, #tpu.memory_space<vmem>>, vector<64x128xbf16>,
    return
  }
  func.func @transform_0(%arg0: i32) -> (i32, i32) {
    %c0_i32 = arith.constant 0 : i32
    %c0_i32_0 = arith.constant 0 : i32
    return %arg0, %c0_i32 : i32, i32
  }
  func.func @transform_1(%arg0: i32) -> (i32, i32) {
    %c0_i32 = arith.constant 0 : i32
    %c0_i32_0 = arith.constant 0 : i32
    %c0_i32_1 = arith.constant 0 : i32
    return %c0_i32, %c0_i32_0 : i32, i32
  }
  func.func @transform_2(%arg0: i32) -> (i32, i32) {
    %c0_i32 = arith.constant 0 : i32
    %c0_i32_0 = arith.constant 0 : i32
    return %arg0, %c0_i32 : i32, i32
  }
}

module attributes {stable_mosaic.version = 11 : i64} {
  func.func @_maxpool_kernel(%arg0: i32, %arg1: memref<1x5x5x128xbf16, #tpu.memory_space<vmem>>, %arg2: memref<1x5x5x128xbf16, #tpu.memory_space<vmem>>, %arg3: memref<1x5x5x128xbf16, #tpu.memory_space<vmem>>, %arg4: memref<1x5x5x128xbf16, #tpu.memory_space<vmem>>, %arg5: memref<1x4x4x128xbf16, #tpu.memory_space<vmem>>) attributes {dimension_semantics = [#tpu.dimension_semantics<parallel>], iteration_bounds = array<i64: 2>, scalar_prefetch = 0 : i64, scratch_operands = 0 : i64, tpu.core_type = #tpu.core_type<tc>, window_params = [{transform_indices = @transform_0, window_bounds = array<i64: 1, 5, 5, 128>}, {transform_indices = @transform_1, window_bounds = array<i64: 1, 5, 5, 128>}, {transform_indices = @transform_2, window_bounds = array<i64: 1, 5, 5, 128>}, {transform_indices = @transform_3, window_bounds = array<i64: 1, 5, 5, 128>}, {transform_indices = @transform_4, window_bounds = array<i64: 1, 4, 4, 128>}]} {
    %c0 = arith.constant 0 : index
    %c0_0 = arith.constant 0 : index
    %c0_1 = arith.constant 0 : index
    %c0_2 = arith.constant 0 : index
    %0 = vector.load %arg1[%c0, %c0_0, %c0_1, %c0_2] : memref<1x5x5x128xbf16, #tpu.memory_space<vmem>>, vector<1x4x4x128xbf16>
    %1 = vector.shape_cast %0 : vector<1x4x4x128xbf16> to vector<4x4x128xbf16>
    %2 = arith.extf %1 : vector<4x4x128xbf16> to vector<4x4x128xf32>
    %c0_3 = arith.constant 0 : index
    %c0_4 = arith.constant 0 : index
    %c0_5 = arith.constant 0 : index
    %c0_6 = arith.constant 0 : index
    %3 = vector.load %arg2[%c0_3, %c0_4, %c0_5, %c0_6] : memref<1x5x5x128xbf16, #tpu.memory_space<vmem>>, vector<1x4x4x128xbf16>
    %4 = vector.shape_cast %3 : vector<1x4x4x128xbf16> to vector<4x4x128xbf16>
    %5 = arith.extf %4 : vector<4x4x128xbf16> to vector<4x4x128xf32>
    %6 = arith.maximumf %2, %5 : vector<4x4x128xf32>
    %c0_7 = arith.constant 0 : index
    %c0_8 = arith.constant 0 : index
    %c1 = arith.constant 1 : index
    %c0_9 = arith.constant 0 : index
    %7 = vector.load %arg1[%c0_7, %c0_8, %c1, %c0_9] : memref<1x5x5x128xbf16, #tpu.memory_space<vmem>>, vector<1x4x4x128xbf16>
    %8 = vector.shape_cast %7 : vector<1x4x4x128xbf16> to vector<4x4x128xbf16>
    %9 = arith.extf %8 : vector<4x4x128xbf16> to vector<4x4x128xf32>
    %10 = arith.maximumf %6, %9 : vector<4x4x128xf32>
    %c0_10 = arith.constant 0 : index
    %c0_11 = arith.constant 0 : index
    %c0_12 = arith.constant 0 : index
    %c0_13 = arith.constant 0 : index
    %11 = vector.load %arg3[%c0_10, %c0_11, %c0_12, %c0_13] : memref<1x5x5x128xbf16, #tpu.memory_space<vmem>>, vector<1x4x4x128xbf16>
    %12 = vector.shape_cast %11 : vector<1x4x4x128xbf16> to vector<4x4x128xbf16>
    %13 = arith.extf %12 : vector<4x4x128xbf16> to vector<4x4x128xf32>
    %14 = arith.maximumf %10, %13 : vector<4x4x128xf32>
    %c0_14 = arith.constant 0 : index
    %c0_15 = arith.constant 0 : index
    %c0_16 = arith.constant 0 : index
    %c0_17 = arith.constant 0 : index
    %15 = vector.load %arg4[%c0_14, %c0_15, %c0_16, %c0_17] : memref<1x5x5x128xbf16, #tpu.memory_space<vmem>>, vector<1x4x4x128xbf16>
    %16 = vector.shape_cast %15 : vector<1x4x4x128xbf16> to vector<4x4x128xbf16>
    %17 = arith.extf %16 : vector<4x4x128xbf16> to vector<4x4x128xf32>
    %18 = arith.maximumf %14, %17 : vector<4x4x128xf32>
    %c0_18 = arith.constant 0 : index
    %c0_19 = arith.constant 0 : index
    %c1_20 = arith.constant 1 : index
    %c0_21 = arith.constant 0 : index
    %19 = vector.load %arg3[%c0_18, %c0_19, %c1_20, %c0_21] : memref<1x5x5x128xbf16, #tpu.memory_space<vmem>>, vector<1x4x4x128xbf16>
    %20 = vector.shape_cast %19 : vector<1x4x4x128xbf16> to vector<4x4x128xbf16>
    %21 = arith.extf %20 : vector<4x4x128xbf16> to vector<4x4x128xf32>
    %22 = arith.maximumf %18, %21 : vector<4x4x128xf32>
    %c0_22 = arith.constant 0 : index
    %c1_23 = arith.constant 1 : index
    %c0_24 = arith.constant 0 : index
    %c0_25 = arith.constant 0 : index
    %23 = vector.load %arg1[%c0_22, %c1_23, %c0_24, %c0_25] : memref<1x5x5x128xbf16, #tpu.memory_space<vmem>>, vector<1x4x4x128xbf16>
    %24 = vector.shape_cast %23 : vector<1x4x4x128xbf16> to vector<4x4x128xbf16>
    %25 = arith.extf %24 : vector<4x4x128xbf16> to vector<4x4x128xf32>
    %26 = arith.maximumf %22, %25 : vector<4x4x128xf32>
    %c0_26 = arith.constant 0 : index
    %c1_27 = arith.constant 1 : index
    %c0_28 = arith.constant 0 : index
    %c0_29 = arith.constant 0 : index
    %27 = vector.load %arg2[%c0_26, %c1_27, %c0_28, %c0_29] : memref<1x5x5x128xbf16, #tpu.memory_space<vmem>>, vector<1x4x4x128xbf16>
    %28 = vector.shape_cast %27 : vector<1x4x4x128xbf16> to vector<4x4x128xbf16>
    %29 = arith.extf %28 : vector<4x4x128xbf16> to vector<4x4x128xf32>
    %30 = arith.maximumf %26, %29 : vector<4x4x128xf32>
    %c0_30 = arith.constant 0 : index
    %c1_31 = arith.constant 1 : index
    %c1_32 = arith.constant 1 : index
    %c0_33 = arith.constant 0 : index
    %31 = vector.load %arg1[%c0_30, %c1_31, %c1_32, %c0_33] : memref<1x5x5x128xbf16, #tpu.memory_space<vmem>>, vector<1x4x4x128xbf16>
    %32 = vector.shape_cast %31 : vector<1x4x4x128xbf16> to vector<4x4x128xbf16>
    %33 = arith.extf %32 : vector<4x4x128xbf16> to vector<4x4x128xf32>
    %34 = arith.maximumf %30, %33 : vector<4x4x128xf32>
    %35 = arith.truncf %34 : vector<4x4x128xf32> to vector<4x4x128xbf16>
    %c0_34 = arith.constant 0 : index
    %c0_35 = arith.constant 0 : index
    %c0_36 = arith.constant 0 : index
    %c0_37 = arith.constant 0 : index
    %36 = vector.load %arg5[%c0_34, %c0_35, %c0_36, %c0_37] : memref<1x4x4x128xbf16, #tpu.memory_space<vmem>>, vector<1x4x4x128xbf16>
    %37 = vector.shape_cast %36 : vector<1x4x4x128xbf16> to vector<4x4x128xbf16>
    %38 = vector.shape_cast %35 : vector<4x4x128xbf16> to vector<1x4x4x128xbf16>
    tpu.vector_store %arg5[%c0_34, %c0_35, %c0_36, %c0_37], %38 {strides = array<i32>} : memref<1x4x4x128xbf16, #tpu.memory_space<vmem>>, vector<1x4x4x128xbf16>,
    return
  }
  func.func @transform_0(%arg0: i32) -> (i32, i32, i32, i32) {
    %c0_i32 = arith.constant 0 : i32
    %c0_i32_0 = arith.constant 0 : i32
    %c0_i32_1 = arith.constant 0 : i32
    %c0_i32_2 = arith.constant 0 : i32
    return %arg0, %c0_i32, %c0_i32_0, %c0_i32_1 : i32, i32, i32, i32
  }
  func.func @transform_1(%arg0: i32) -> (i32, i32, i32, i32) {
    %c0_i32 = arith.constant 0 : i32
    %c0_i32_0 = arith.constant 0 : i32
    %c0_i32_1 = arith.constant 0 : i32
    %c0_i32_2 = arith.constant 0 : i32
    return %arg0, %c0_i32, %c0_i32_0, %c0_i32_1 : i32, i32, i32, i32
  }
  func.func @transform_2(%arg0: i32) -> (i32, i32, i32, i32) {
    %c0_i32 = arith.constant 0 : i32
    %c0_i32_0 = arith.constant 0 : i32
    %c0_i32_1 = arith.constant 0 : i32
    %c0_i32_2 = arith.constant 0 : i32
    return %arg0, %c0_i32, %c0_i32_0, %c0_i32_1 : i32, i32, i32, i32
  }
  func.func @transform_3(%arg0: i32) -> (i32, i32, i32, i32) {
    %c0_i32 = arith.constant 0 : i32
    %c0_i32_0 = arith.constant 0 : i32
    %c0_i32_1 = arith.constant 0 : i32
    %c0_i32_2 = arith.constant 0 : i32
    return %arg0, %c0_i32, %c0_i32_0, %c0_i32_1 : i32, i32, i32, i32
  }
  func.func @transform_4(%arg0: i32) -> (i32, i32, i32, i32) {
    %c0_i32 = arith.constant 0 : i32
    %c0_i32_0 = arith.constant 0 : i32
    %c0_i32_1 = arith.constant 0 : i32
    %c0_i32_2 = arith.constant 0 : i32
    return %arg0, %c0_i32, %c0_i32_0, %c0_i32_1 : i32, i32, i32, i32
  }
}

module attributes {stable_mosaic.version = 11 : i64} {
  func.func @_mm_stats_kernel(%arg0: i32, %arg1: memref<16x1152xbf16, #tpu.memory_space<vmem>>, %arg2: memref<1152x128xbf16, #tpu.memory_space<vmem>>, %arg3: memref<16x128xbf16, #tpu.memory_space<vmem>>, %arg4: memref<1x2x128xf32, #tpu.memory_space<vmem>>) attributes {dimension_semantics = [#tpu.dimension_semantics<parallel>], iteration_bounds = array<i64: 2>, scalar_prefetch = 0 : i64, scratch_operands = 0 : i64, tpu.core_type = #tpu.core_type<tc>, window_params = [{transform_indices = @transform_0, window_bounds = array<i64: 16, 1152>}, {pipeline_mode = #tpu.pipeline_mode<synchronous>, transform_indices = @transform_1, window_bounds = array<i64: 1152, 128>}, {transform_indices = @transform_2, window_bounds = array<i64: 16, 128>}, {transform_indices = @transform_3, window_bounds = array<i64: 1, 2, 128>}]} {
    %c0 = arith.constant 0 : index
    %c0_0 = arith.constant 0 : index
    %0 = vector.load %arg1[%c0, %c0_0] : memref<16x1152xbf16, #tpu.memory_space<vmem>>, vector<16x1152xbf16>
    %c0_1 = arith.constant 0 : index
    %c0_2 = arith.constant 0 : index
    %1 = vector.load %arg2[%c0_1, %c0_2] : memref<1152x128xbf16, #tpu.memory_space<vmem>>, vector<1152x128xbf16>
    %cst = arith.constant dense<0.000000e+00> : vector<16x128xf32>
    %2 = tpu.matmul %0, %1, %cst {dimension_numbers = #tpu.dot_dimension_numbers<[1], [0], [0], [1], [0, 0, 1, 1], [], []>} : vector<16x1152xbf16>, vector<1152x128xbf16>, vector<16x128xf32> -> vector<16x128xf32>
    %3 = arith.truncf %2 : vector<16x128xf32> to vector<16x128xbf16>
    %c0_3 = arith.constant 0 : index
    %c0_4 = arith.constant 0 : index
    %4 = vector.load %arg3[%c0_3, %c0_4] : memref<16x128xbf16, #tpu.memory_space<vmem>>, vector<16x128xbf16>
    tpu.vector_store %arg3[%c0_3, %c0_4], %3 {strides = array<i32>} : memref<16x128xbf16, #tpu.memory_space<vmem>>, vector<16x128xbf16>,
    %cst_5 = arith.constant dense<0.000000e+00> : vector<128xf32>
    %5 = vector.multi_reduction <add>, %2, %cst_5 [0] : vector<16x128xf32> to vector<128xf32>
    %6 = vector.shape_cast %5 : vector<128xf32> to vector<1x128xf32>
    %c0_6 = arith.constant 0 : index
    %c0_7 = arith.constant 0 : index
    %c0_8 = arith.constant 0 : index
    %7 = vector.load %arg4[%c0_6, %c0_7, %c0_8] : memref<1x2x128xf32, #tpu.memory_space<vmem>>, vector<1x1x128xf32>
    %8 = vector.shape_cast %7 : vector<1x1x128xf32> to vector<1x128xf32>
    %9 = vector.shape_cast %6 : vector<1x128xf32> to vector<1x1x128xf32>
    tpu.vector_store %arg4[%c0_6, %c0_7, %c0_8], %9 {strides = array<i32>} : memref<1x2x128xf32, #tpu.memory_space<vmem>>, vector<1x1x128xf32>,
    %10 = arith.mulf %2, %2 : vector<16x128xf32>
    %cst_9 = arith.constant dense<0.000000e+00> : vector<128xf32>
    %11 = vector.multi_reduction <add>, %10, %cst_9 [0] : vector<16x128xf32> to vector<128xf32>
    %12 = vector.shape_cast %11 : vector<128xf32> to vector<1x128xf32>
    %c0_10 = arith.constant 0 : index
    %c1 = arith.constant 1 : index
    %c0_11 = arith.constant 0 : index
    %13 = vector.load %arg4[%c0_10, %c1, %c0_11] : memref<1x2x128xf32, #tpu.memory_space<vmem>>, vector<1x1x128xf32>
    %14 = vector.shape_cast %13 : vector<1x1x128xf32> to vector<1x128xf32>
    %15 = vector.shape_cast %12 : vector<1x128xf32> to vector<1x1x128xf32>
    tpu.vector_store %arg4[%c0_10, %c1, %c0_11], %15 {strides = array<i32>} : memref<1x2x128xf32, #tpu.memory_space<vmem>>, vector<1x1x128xf32>,
    return
  }
  func.func @transform_0(%arg0: i32) -> (i32, i32) {
    %c0_i32 = arith.constant 0 : i32
    %c0_i32_0 = arith.constant 0 : i32
    return %arg0, %c0_i32 : i32, i32
  }
  func.func @transform_1(%arg0: i32) -> (i32, i32) {
    %c0_i32 = arith.constant 0 : i32
    %c0_i32_0 = arith.constant 0 : i32
    %c0_i32_1 = arith.constant 0 : i32
    return %c0_i32, %c0_i32_0 : i32, i32
  }
  func.func @transform_2(%arg0: i32) -> (i32, i32) {
    %c0_i32 = arith.constant 0 : i32
    %c0_i32_0 = arith.constant 0 : i32
    return %arg0, %c0_i32 : i32, i32
  }
  func.func @transform_3(%arg0: i32) -> (i32, i32, i32) {
    %c0_i32 = arith.constant 0 : i32
    %c0_i32_0 = arith.constant 0 : i32
    %c0_i32_1 = arith.constant 0 : i32
    return %arg0, %c0_i32, %c0_i32_0 : i32, i32, i32
  }
}

module attributes {stable_mosaic.version = 11 : i64} {
  func.func @_bn_act_kernel(%arg0: i32, %arg1: memref<16x128xbf16, #tpu.memory_space<vmem>>, %arg2: memref<2x128xf32, #tpu.memory_space<vmem>>, %arg3: memref<16x128xbf16, #tpu.memory_space<vmem>>) attributes {dimension_semantics = [#tpu.dimension_semantics<parallel>], iteration_bounds = array<i64: 2>, scalar_prefetch = 0 : i64, scratch_operands = 0 : i64, tpu.core_type = #tpu.core_type<tc>, window_params = [{transform_indices = @transform_0, window_bounds = array<i64: 16, 128>}, {pipeline_mode = #tpu.pipeline_mode<synchronous>, transform_indices = @transform_1, window_bounds = array<i64: 2, 128>}, {transform_indices = @transform_2, window_bounds = array<i64: 16, 128>}]} {
    %c0 = arith.constant 0 : index
    %c0_0 = arith.constant 0 : index
    %0 = vector.load %arg1[%c0, %c0_0] : memref<16x128xbf16, #tpu.memory_space<vmem>>, vector<16x128xbf16>
    %1 = arith.extf %0 : vector<16x128xbf16> to vector<16x128xf32>
    %c0_1 = arith.constant 0 : index
    %c0_2 = arith.constant 0 : index
    %2 = vector.load %arg2[%c0_1, %c0_2] : memref<2x128xf32, #tpu.memory_space<vmem>>, vector<1x128xf32>
    %3 = vector.broadcast %2 : vector<1x128xf32> to vector<16x128xf32>
    %4 = arith.mulf %1, %3 : vector<16x128xf32>
    %c1 = arith.constant 1 : index
    %c0_3 = arith.constant 0 : index
    %5 = vector.load %arg2[%c1, %c0_3] : memref<2x128xf32, #tpu.memory_space<vmem>>, vector<1x128xf32>
    %6 = vector.broadcast %5 : vector<1x128xf32> to vector<16x128xf32>
    %7 = arith.addf %4, %6 : vector<16x128xf32>
    %cst = arith.constant 0.000000e+00 : f32
    %8 = vector.broadcast %cst : f32 to vector<16x128xf32>
    %9 = arith.maximumf %7, %8 : vector<16x128xf32>
    %10 = arith.truncf %9 : vector<16x128xf32> to vector<16x128xbf16>
    %c0_4 = arith.constant 0 : index
    %c0_5 = arith.constant 0 : index
    %11 = vector.load %arg3[%c0_4, %c0_5] : memref<16x128xbf16, #tpu.memory_space<vmem>>, vector<16x128xbf16>
    tpu.vector_store %arg3[%c0_4, %c0_5], %10 {strides = array<i32>} : memref<16x128xbf16, #tpu.memory_space<vmem>>, vector<16x128xbf16>,
    return
  }
  func.func @transform_0(%arg0: i32) -> (i32, i32) {
    %c0_i32 = arith.constant 0 : i32
    %c0_i32_0 = arith.constant 0 : i32
    return %arg0, %c0_i32 : i32, i32
  }
  func.func @transform_1(%arg0: i32) -> (i32, i32) {
    %c0_i32 = arith.constant 0 : i32
    %c0_i32_0 = arith.constant 0 : i32
    %c0_i32_1 = arith.constant 0 : i32
    return %c0_i32, %c0_i32_0 : i32, i32
  }
  func.func @transform_2(%arg0: i32) -> (i32, i32) {
    %c0_i32 = arith.constant 0 : i32
    %c0_i32_0 = arith.constant 0 : i32
    return %arg0, %c0_i32 : i32, i32
  }
}

module attributes {stable_mosaic.version = 11 : i64} {
  func.func @_bn_add_kernel(%arg0: i32, %arg1: memref<16x128xbf16, #tpu.memory_space<vmem>>, %arg2: memref<16x128xbf16, #tpu.memory_space<vmem>>, %arg3: memref<4x128xf32, #tpu.memory_space<vmem>>, %arg4: memref<16x128xbf16, #tpu.memory_space<vmem>>) attributes {dimension_semantics = [#tpu.dimension_semantics<parallel>], iteration_bounds = array<i64: 2>, scalar_prefetch = 0 : i64, scratch_operands = 0 : i64, tpu.core_type = #tpu.core_type<tc>, window_params = [{transform_indices = @transform_0, window_bounds = array<i64: 16, 128>}, {transform_indices = @transform_1, window_bounds = array<i64: 16, 128>}, {pipeline_mode = #tpu.pipeline_mode<synchronous>, transform_indices = @transform_2, window_bounds = array<i64: 4, 128>}, {transform_indices = @transform_3, window_bounds = array<i64: 16, 128>}]} {
    %c0 = arith.constant 0 : index
    %c0_0 = arith.constant 0 : index
    %0 = vector.load %arg1[%c0, %c0_0] : memref<16x128xbf16, #tpu.memory_space<vmem>>, vector<16x128xbf16>
    %1 = arith.extf %0 : vector<16x128xbf16> to vector<16x128xf32>
    %c0_1 = arith.constant 0 : index
    %c0_2 = arith.constant 0 : index
    %2 = vector.load %arg2[%c0_1, %c0_2] : memref<16x128xbf16, #tpu.memory_space<vmem>>, vector<16x128xbf16>
    %3 = arith.extf %2 : vector<16x128xbf16> to vector<16x128xf32>
    %c0_3 = arith.constant 0 : index
    %c0_4 = arith.constant 0 : index
    %4 = vector.load %arg3[%c0_3, %c0_4] : memref<4x128xf32, #tpu.memory_space<vmem>>, vector<1x128xf32>
    %5 = vector.broadcast %4 : vector<1x128xf32> to vector<16x128xf32>
    %6 = arith.mulf %1, %5 : vector<16x128xf32>
    %c1 = arith.constant 1 : index
    %c0_5 = arith.constant 0 : index
    %7 = vector.load %arg3[%c1, %c0_5] : memref<4x128xf32, #tpu.memory_space<vmem>>, vector<1x128xf32>
    %8 = vector.broadcast %7 : vector<1x128xf32> to vector<16x128xf32>
    %9 = arith.addf %6, %8 : vector<16x128xf32>
    %c2 = arith.constant 2 : index
    %c0_6 = arith.constant 0 : index
    %10 = vector.load %arg3[%c2, %c0_6] : memref<4x128xf32, #tpu.memory_space<vmem>>, vector<1x128xf32>
    %11 = vector.broadcast %10 : vector<1x128xf32> to vector<16x128xf32>
    %12 = arith.mulf %3, %11 : vector<16x128xf32>
    %13 = arith.addf %9, %12 : vector<16x128xf32>
    %c3 = arith.constant 3 : index
    %c0_7 = arith.constant 0 : index
    %14 = vector.load %arg3[%c3, %c0_7] : memref<4x128xf32, #tpu.memory_space<vmem>>, vector<1x128xf32>
    %15 = vector.broadcast %14 : vector<1x128xf32> to vector<16x128xf32>
    %16 = arith.addf %13, %15 : vector<16x128xf32>
    %cst = arith.constant 0.000000e+00 : f32
    %17 = vector.broadcast %cst : f32 to vector<16x128xf32>
    %18 = arith.maximumf %16, %17 : vector<16x128xf32>
    %19 = arith.truncf %18 : vector<16x128xf32> to vector<16x128xbf16>
    %c0_8 = arith.constant 0 : index
    %c0_9 = arith.constant 0 : index
    %20 = vector.load %arg4[%c0_8, %c0_9] : memref<16x128xbf16, #tpu.memory_space<vmem>>, vector<16x128xbf16>
    tpu.vector_store %arg4[%c0_8, %c0_9], %19 {strides = array<i32>} : memref<16x128xbf16, #tpu.memory_space<vmem>>, vector<16x128xbf16>,
    return
  }
  func.func @transform_0(%arg0: i32) -> (i32, i32) {
    %c0_i32 = arith.constant 0 : i32
    %c0_i32_0 = arith.constant 0 : i32
    return %arg0, %c0_i32 : i32, i32
  }
  func.func @transform_1(%arg0: i32) -> (i32, i32) {
    %c0_i32 = arith.constant 0 : i32
    %c0_i32_0 = arith.constant 0 : i32
    return %arg0, %c0_i32 : i32, i32
  }
  func.func @transform_2(%arg0: i32) -> (i32, i32) {
    %c0_i32 = arith.constant 0 : i32
    %c0_i32_0 = arith.constant 0 : i32
    %c0_i32_1 = arith.constant 0 : i32
    return %c0_i32, %c0_i32_0 : i32, i32
  }
  func.func @transform_3(%arg0: i32) -> (i32, i32) {
    %c0_i32 = arith.constant 0 : i32
    %c0_i32_0 = arith.constant 0 : i32
    return %arg0, %c0_i32 : i32, i32
  }
}

module attributes {stable_mosaic.version = 11 : i64} {
  func.func @_mm_stats_kernel(%arg0: i32, %arg1: memref<16x128xbf16, #tpu.memory_space<vmem>>, %arg2: memref<128x128xbf16, #tpu.memory_space<vmem>>, %arg3: memref<16x128xbf16, #tpu.memory_space<vmem>>, %arg4: memref<1x2x128xf32, #tpu.memory_space<vmem>>) attributes {dimension_semantics = [#tpu.dimension_semantics<parallel>], iteration_bounds = array<i64: 2>, scalar_prefetch = 0 : i64, scratch_operands = 0 : i64, tpu.core_type = #tpu.core_type<tc>, window_params = [{transform_indices = @transform_0, window_bounds = array<i64: 16, 128>}, {pipeline_mode = #tpu.pipeline_mode<synchronous>, transform_indices = @transform_1, window_bounds = array<i64: 128, 128>}, {transform_indices = @transform_2, window_bounds = array<i64: 16, 128>}, {transform_indices = @transform_3, window_bounds = array<i64: 1, 2, 128>}]} {
    %c0 = arith.constant 0 : index
    %c0_0 = arith.constant 0 : index
    %0 = vector.load %arg1[%c0, %c0_0] : memref<16x128xbf16, #tpu.memory_space<vmem>>, vector<16x128xbf16>
    %c0_1 = arith.constant 0 : index
    %c0_2 = arith.constant 0 : index
    %1 = vector.load %arg2[%c0_1, %c0_2] : memref<128x128xbf16, #tpu.memory_space<vmem>>, vector<128x128xbf16>
    %cst = arith.constant dense<0.000000e+00> : vector<16x128xf32>
    %2 = tpu.matmul %0, %1, %cst {dimension_numbers = #tpu.dot_dimension_numbers<[1], [0], [0], [1], [0, 0, 1, 1], [], []>} : vector<16x128xbf16>, vector<128x128xbf16>, vector<16x128xf32> -> vector<16x128xf32>
    %3 = arith.truncf %2 : vector<16x128xf32> to vector<16x128xbf16>
    %c0_3 = arith.constant 0 : index
    %c0_4 = arith.constant 0 : index
    %4 = vector.load %arg3[%c0_3, %c0_4] : memref<16x128xbf16, #tpu.memory_space<vmem>>, vector<16x128xbf16>
    tpu.vector_store %arg3[%c0_3, %c0_4], %3 {strides = array<i32>} : memref<16x128xbf16, #tpu.memory_space<vmem>>, vector<16x128xbf16>,
    %cst_5 = arith.constant dense<0.000000e+00> : vector<128xf32>
    %5 = vector.multi_reduction <add>, %2, %cst_5 [0] : vector<16x128xf32> to vector<128xf32>
    %6 = vector.shape_cast %5 : vector<128xf32> to vector<1x128xf32>
    %c0_6 = arith.constant 0 : index
    %c0_7 = arith.constant 0 : index
    %c0_8 = arith.constant 0 : index
    %7 = vector.load %arg4[%c0_6, %c0_7, %c0_8] : memref<1x2x128xf32, #tpu.memory_space<vmem>>, vector<1x1x128xf32>
    %8 = vector.shape_cast %7 : vector<1x1x128xf32> to vector<1x128xf32>
    %9 = vector.shape_cast %6 : vector<1x128xf32> to vector<1x1x128xf32>
    tpu.vector_store %arg4[%c0_6, %c0_7, %c0_8], %9 {strides = array<i32>} : memref<1x2x128xf32, #tpu.memory_space<vmem>>, vector<1x1x128xf32>,
    %10 = arith.mulf %2, %2 : vector<16x128xf32>
    %cst_9 = arith.constant dense<0.000000e+00> : vector<128xf32>
    %11 = vector.multi_reduction <add>, %10, %cst_9 [0] : vector<16x128xf32> to vector<128xf32>
    %12 = vector.shape_cast %11 : vector<128xf32> to vector<1x128xf32>
    %c0_10 = arith.constant 0 : index
    %c1 = arith.constant 1 : index
    %c0_11 = arith.constant 0 : index
    %13 = vector.load %arg4[%c0_10, %c1, %c0_11] : memref<1x2x128xf32, #tpu.memory_space<vmem>>, vector<1x1x128xf32>
    %14 = vector.shape_cast %13 : vector<1x1x128xf32> to vector<1x128xf32>
    %15 = vector.shape_cast %12 : vector<1x128xf32> to vector<1x1x128xf32>
    tpu.vector_store %arg4[%c0_10, %c1, %c0_11], %15 {strides = array<i32>} : memref<1x2x128xf32, #tpu.memory_space<vmem>>, vector<1x1x128xf32>,
    return
  }
  func.func @transform_0(%arg0: i32) -> (i32, i32) {
    %c0_i32 = arith.constant 0 : i32
    %c0_i32_0 = arith.constant 0 : i32
    return %arg0, %c0_i32 : i32, i32
  }
  func.func @transform_1(%arg0: i32) -> (i32, i32) {
    %c0_i32 = arith.constant 0 : i32
    %c0_i32_0 = arith.constant 0 : i32
    %c0_i32_1 = arith.constant 0 : i32
    return %c0_i32, %c0_i32_0 : i32, i32
  }
  func.func @transform_2(%arg0: i32) -> (i32, i32) {
    %c0_i32 = arith.constant 0 : i32
    %c0_i32_0 = arith.constant 0 : i32
    return %arg0, %c0_i32 : i32, i32
  }
  func.func @transform_3(%arg0: i32) -> (i32, i32, i32) {
    %c0_i32 = arith.constant 0 : i32
    %c0_i32_0 = arith.constant 0 : i32
    %c0_i32_1 = arith.constant 0 : i32
    return %arg0, %c0_i32, %c0_i32_0 : i32, i32, i32
  }
}

module attributes {stable_mosaic.version = 11 : i64} {
  func.func @_bn_add_pool_kernel(%arg0: i32, %arg1: memref<1x16x128xbf16, #tpu.memory_space<vmem>>, %arg2: memref<1x16x128xbf16, #tpu.memory_space<vmem>>, %arg3: memref<4x128xf32, #tpu.memory_space<vmem>>, %arg4: memref<1x1x128xf32, #tpu.memory_space<vmem>>) attributes {dimension_semantics = [#tpu.dimension_semantics<parallel>], iteration_bounds = array<i64: 2>, scalar_prefetch = 0 : i64, scratch_operands = 0 : i64, tpu.core_type = #tpu.core_type<tc>, window_params = [{transform_indices = @transform_0, window_bounds = array<i64: 1, 16, 128>}, {transform_indices = @transform_1, window_bounds = array<i64: 1, 16, 128>}, {pipeline_mode = #tpu.pipeline_mode<synchronous>, transform_indices = @transform_2, window_bounds = array<i64: 4, 128>}, {transform_indices = @transform_3, window_bounds = array<i64: 1, 1, 128>}]} {
    %c0 = arith.constant 0 : index
    %c0_0 = arith.constant 0 : index
    %c0_1 = arith.constant 0 : index
    %0 = vector.load %arg1[%c0, %c0_0, %c0_1] : memref<1x16x128xbf16, #tpu.memory_space<vmem>>, vector<1x16x128xbf16>
    %1 = vector.shape_cast %0 : vector<1x16x128xbf16> to vector<16x128xbf16>
    %2 = arith.extf %1 : vector<16x128xbf16> to vector<16x128xf32>
    %c0_2 = arith.constant 0 : index
    %c0_3 = arith.constant 0 : index
    %c0_4 = arith.constant 0 : index
    %3 = vector.load %arg2[%c0_2, %c0_3, %c0_4] : memref<1x16x128xbf16, #tpu.memory_space<vmem>>, vector<1x16x128xbf16>
    %4 = vector.shape_cast %3 : vector<1x16x128xbf16> to vector<16x128xbf16>
    %5 = arith.extf %4 : vector<16x128xbf16> to vector<16x128xf32>
    %c0_5 = arith.constant 0 : index
    %c0_6 = arith.constant 0 : index
    %6 = vector.load %arg3[%c0_5, %c0_6] : memref<4x128xf32, #tpu.memory_space<vmem>>, vector<1x128xf32>
    %7 = vector.broadcast %6 : vector<1x128xf32> to vector<16x128xf32>
    %8 = arith.mulf %2, %7 : vector<16x128xf32>
    %c1 = arith.constant 1 : index
    %c0_7 = arith.constant 0 : index
    %9 = vector.load %arg3[%c1, %c0_7] : memref<4x128xf32, #tpu.memory_space<vmem>>, vector<1x128xf32>
    %10 = vector.broadcast %9 : vector<1x128xf32> to vector<16x128xf32>
    %11 = arith.addf %8, %10 : vector<16x128xf32>
    %c2 = arith.constant 2 : index
    %c0_8 = arith.constant 0 : index
    %12 = vector.load %arg3[%c2, %c0_8] : memref<4x128xf32, #tpu.memory_space<vmem>>, vector<1x128xf32>
    %13 = vector.broadcast %12 : vector<1x128xf32> to vector<16x128xf32>
    %14 = arith.mulf %5, %13 : vector<16x128xf32>
    %15 = arith.addf %11, %14 : vector<16x128xf32>
    %c3 = arith.constant 3 : index
    %c0_9 = arith.constant 0 : index
    %16 = vector.load %arg3[%c3, %c0_9] : memref<4x128xf32, #tpu.memory_space<vmem>>, vector<1x128xf32>
    %17 = vector.broadcast %16 : vector<1x128xf32> to vector<16x128xf32>
    %18 = arith.addf %15, %17 : vector<16x128xf32>
    %cst = arith.constant 0.000000e+00 : f32
    %19 = vector.broadcast %cst : f32 to vector<16x128xf32>
    %20 = arith.maximumf %18, %19 : vector<16x128xf32>
    %cst_10 = arith.constant dense<0.000000e+00> : vector<128xf32>
    %21 = vector.multi_reduction <add>, %20, %cst_10 [0] : vector<16x128xf32> to vector<128xf32>
    %22 = vector.shape_cast %21 : vector<128xf32> to vector<1x128xf32>
    %cst_11 = arith.constant 1.600000e+01 : f32
    %23 = vector.broadcast %cst_11 : f32 to vector<1x128xf32>
    %24 = arith.divf %22, %23 : vector<1x128xf32>
    %c0_12 = arith.constant 0 : index
    %c0_13 = arith.constant 0 : index
    %c0_14 = arith.constant 0 : index
    %25 = vector.load %arg4[%c0_12, %c0_13, %c0_14] : memref<1x1x128xf32, #tpu.memory_space<vmem>>, vector<1x1x128xf32>
    %26 = vector.shape_cast %25 : vector<1x1x128xf32> to vector<1x128xf32>
    %27 = vector.shape_cast %24 : vector<1x128xf32> to vector<1x1x128xf32>
    tpu.vector_store %arg4[%c0_12, %c0_13, %c0_14], %27 {strides = array<i32>} : memref<1x1x128xf32, #tpu.memory_space<vmem>>, vector<1x1x128xf32>,
    return
  }
  func.func @transform_0(%arg0: i32) -> (i32, i32, i32) {
    %c0_i32 = arith.constant 0 : i32
    %c0_i32_0 = arith.constant 0 : i32
    %c0_i32_1 = arith.constant 0 : i32
    return %arg0, %c0_i32, %c0_i32_0 : i32, i32, i32
  }
  func.func @transform_1(%arg0: i32) -> (i32, i32, i32) {
    %c0_i32 = arith.constant 0 : i32
    %c0_i32_0 = arith.constant 0 : i32
    %c0_i32_1 = arith.constant 0 : i32
    return %arg0, %c0_i32, %c0_i32_0 : i32, i32, i32
  }
  func.func @transform_2(%arg0: i32) -> (i32, i32) {
    %c0_i32 = arith.constant 0 : i32
    %c0_i32_0 = arith.constant 0 : i32
    %c0_i32_1 = arith.constant 0 : i32
    return %c0_i32, %c0_i32_0 : i32, i32
  }
  func.func @transform_3(%arg0: i32) -> (i32, i32, i32) {
    %c0_i32 = arith.constant 0 : i32
    %c0_i32_0 = arith.constant 0 : i32
    %c0_i32_1 = arith.constant 0 : i32
    return %arg0, %c0_i32, %c0_i32_0 : i32, i32, i32
  }
}

</mosaic_0001>

<bundles_post_ra>
// kernel: _lambda_.13
= control target key start
LH: loop header
LB: loop body
LE: loop exit
PB: predicated region body
PF: predicated region fallthrough
CT: control target
= control target key end

     0   :  { %s349_s9 = smov 0   ;;  %s379_s0 = inlined_call_operand.vmem [shape: bf16[128,128], index: 0, kind: input, shape index: {}]   ;;  %s380_s1 = inlined_call_operand.vmem [shape: f32[2,128], index: 1, kind: input, shape index: {}]   ;;  %s381_s2 = inlined_call_operand.vmem [shape: bf16[128,128], index: 2, kind: output, shape index: {}]  }
   0x1 LB: > { %s263_s10 = sadd.s32 4294967295, %s332_s9   ;;  %p267_p0 = scmp.ge.s32.totalorder %s332_s9, 1  ;;  %s332_s9 = sphi %s349_s9, %s12_s9  }
   0x2   : > { %p113_p1 = scmp.lt.s32.totalorder %s332_s9, 3 }
   0x4   : > { %p114_p2 = pnand %p267_p0, %p113_p1 }
   0x5   : > { %s268_s11 = sshll.u32 (!%p114_p2), %s263_s10, 3 }
   0x6   : > { %117 = sbr.rel (%p114_p2) target bundleno = 29 (0x1d), region = 28  ;;  %p136_p3 = scmp.lt.s32.totalorder (!%p114_p2), %s268_s11, 15 }
   0xb   : > { %s383_s11 = smov (!%p136_p3, %s268_s11), 15  ;;  %v324_v0 = vld [vmem:[%s380_s1] ss:$0 sm:$0xff]  ;;  %v325_v6 = vld [vmem:[%s380_s1 + $0x1] ss:$0 sm:$0xff] }
   0xc   : > { %s269_s12 = sshll.u32 %s383_s11, 2 }
   0xd   : > { %s139_s15 = scalar_lea.vmem %s379_s0, %s269_s12  ;;  %s145_s22 = scalar_lea.vmem %s381_s2, %s269_s12 }
   0xe   : > { %v275_v1 = vld [vmem:[%s139_s15] sm:$0xff]   ;;  %v310_v2 = vld [vmem:[%s139_s15 + $0x8] sm:$0xff]   ;;  %v311_v3 = vld [vmem:[%s139_s15 + $0x10] sm:$0xff]  }
   0xf   : > { %v276_v4 = vunpack.c.l.bf16 %v275_v1  ;;  %v277_v5 = vunpack.c.h.bf16 %v275_v1  ;;  %v280_v7 = vunpack.c.l.bf16 %v310_v2  ;;  %v281_v8 = vunpack.c.h.bf16 %v310_v2  ;;  %v312_v9 = vld [vmem:[%s139_s15 + $0x18] sm:$0xff]  }
  0x10   : > { %v284_v10 = vunpack.c.l.bf16 %v311_v3  ;;  %v285_v11 = vunpack.c.h.bf16 %v311_v3  ;;  %v288_v12 = vunpack.c.l.bf16 %v312_v9  ;;  %v289_v13 = vunpack.c.h.bf16 %v312_v9 }
  0x11   : > { %v165_v14 = vmul.f32 %v324_v0, %v276_v4  ;;  %v166_v15 = vmul.f32 %v324_v0, %v277_v5  ;;  %v167_v16 = vmul.f32 %v324_v0, %v280_v7  ;;  %v168_v17 = vmul.f32 %v324_v0, %v281_v8 }
  0x12   : > { %v169_v18 = vmul.f32 %v324_v0, %v284_v10  ;;  %v170_v19 = vmul.f32 %v324_v0, %v285_v11  ;;  %v171_v20 = vmul.f32 %v324_v0, %v288_v12  ;;  %v172_v21 = vmul.f32 %v324_v0, %v289_v13 }
  0x13   : > { %v175_v22 = vadd.f32 %v325_v6, %v165_v14  ;;  %v176_v23 = vadd.f32 %v325_v6, %v166_v15  ;;  %v177_v24 = vadd.f32 %v325_v6, %v167_v16  ;;  %v178_v25 = vadd.f32 %v325_v6, %v168_v17 }
  0x14   : > { %v179_v26 = vadd.f32 %v325_v6, %v169_v18  ;;  %v180_v27 = vadd.f32 %v325_v6, %v170_v19  ;;  %v181_v28 = vadd.f32 %v325_v6, %v171_v20  ;;  %v182_v29 = vadd.f32 %v325_v6, %v172_v21 }
  0x15   : > { %v183_v30 = vmax.f32 %v175_v22, 0.0  ;;  %v184_v31 = vmax.f32 %v176_v23, 0.0  ;;  %v185_v32 = vmax.f32 %v177_v24, 0.0  ;;  %v186_v33 = vmax.f32 %v178_v25, 0.0 }
  0x16   : > { %v187_v34 = vmax.f32 %v179_v26, 0.0  ;;  %v188_v35 = vmax.f32 %v180_v27, 0.0  ;;  %v189_v36 = vmax.f32 %v181_v28, 0.0  ;;  %v190_v37 = vmax.f32 %v182_v29, 0.0 }
  0x17   : > { %v293_v38 = vpack.c.bf16 %v184_v31, %v183_v30  ;;  %v298_v39 = vpack.c.bf16 %v186_v33, %v185_v32 }
  0x18   : > { %v303_v40 = vpack.c.bf16 %v188_v35, %v187_v34  ;;  %v308_v41 = vpack.c.bf16 %v190_v37, %v189_v36 }
  0x19   : > { %294 = vst [vmem:[%s145_s22] sm:$0xff] %v293_v38  }
  0x1a   : > { %313 = vst [vmem:[%s145_s22 + $0x8] sm:$0xff] %v298_v39  }
  0x1b   : > { %314 = vst [vmem:[%s145_s22 + $0x10] sm:$0xff] %v303_v40  }
  0x1c   : > { %315 = vst [vmem:[%s145_s22 + $0x18] sm:$0xff] %v308_v41  }
  0x1d PF: > { %s12_s9 = sadd.s32 1, %s332_s9  }
  0x1e   : > { %p9_p4 = scmp.ge.s32.totalorder %s12_s9, 4  }
  0x20   :  { %11 = sbr.rel (!%p9_p4) target bundleno = 1 (0x1), region = 58 }

// kernel: _lambda_.12
= control target key start
LH: loop header
LB: loop body
LE: loop exit
PB: predicated region body
PF: predicated region fallthrough
CT: control target
= control target key end

     0   :  { %s737_s12 = smov 0   ;;  %s833_s0 = inlined_call_operand.vmem [shape: bf16[128,196], index: 0, kind: input, shape index: {}]   ;;  %s834_s1 = inlined_call_operand.vmem [shape: bf16[196,128], index: 1, kind: input, shape index: {}]   ;;  %s835_s2 = inlined_call_operand.vmem [shape: bf16[128,128], index: 2, kind: output, shape index: {0}]   ;;  %s836_s3 = inlined_call_operand.vmem [shape: f32[2,2,128], index: 3, kind: output, shape index: {1}]  }
   0x1 LB: > { %s743_s13 = sadd.s32 4294967295, %s715_s12   ;;  %p551_p0 = scmp.ge.s32.totalorder %s715_s12, 1  ;;  %s715_s12 = sphi %s737_s12, %s14_s12  }
   0x2   : > { %p142_p1 = scmp.lt.s32.totalorder %s715_s12, 3 }
   0x4   : > { %p143_p2 = pnand %p551_p0, %p142_p1 }
   0x5   : > { %s552_s18 = sshll.u32 (!%p143_p2), %s743_s13, 3  ;;  %p184_p4 = scmp.lt.s32.totalorder (!%p143_p2), %s743_s13, 1 }
   0x6   : > { %146 = sbr.rel (%p143_p2) target bundleno = 227 (0xe3), region = 28  ;;  %p172_p3 = scmp.lt.s32.totalorder (!%p143_p2), %s552_s18, 15 }
   0xb   : > { %v660_v0 = vld [vmem:[%s834_s1 + $0x38] sm:$0xff]  ;;  %v221_v1 = vld [vmem:[%s834_s1 + $0x60] sm:$0x3]  ;;  %vm346_vm0 = vcmask 1041408   ;;  %v659_v3 = vld [vmem:[%s834_s1 + $0x30] sm:$0xff]  ;;  %s838_s18 = smov (!%p172_p3, %s552_s18), 15 }
   0xc   : > { %v307_v2 = vunpack.c.l.b16 %v221_v1  ;;  %350 = vmatpush.bf16.msra.mxu0 %v660_v0  ;;  %688 = vmatpush.bf16.msra.mxu2 %v660_v0  ;;  %v664_v6 = vld [vmem:[%s834_s1 + $0x58] sm:$0xff]  ;;  %v658_v7 = vld [vmem:[%s834_s1 + $0x28] sm:$0xff]  ;;  %v663_v8 = vld [vmem:[%s834_s1 + $0x50] sm:$0xff]  ;;  %s644_s29 = sshll.u32 %s838_s18, 3  ;;  %vm333_vm1 = vcmask 556032   ;;  %s556_s21 = sshll.u32 %s838_s18, 2 }
   0xd   : > { %v657_v9 = vld [vmem:[%s834_s1 + $0x20] sm:$0xff]  ;;  %v662_v10 = vld [vmem:[%s834_s1 + $0x48] sm:$0xff]  ;;  %v656_v11 = vld [vmem:[%s834_s1 + $0x18] sm:$0xff]  ;;  %s781_s9 = scalar_lea.vmem %s833_s0, %s644_s29  ;;  %s819_s24 = scalar_lea.vmem %s835_s2, %s556_s21 }
   0xe   : > { %v320_v4 = vpack.c.b16 %v307_v2, %v307_v2  ;;  %v661_v12 = vld [vmem:[%s834_s1 + $0x40] sm:$0xff]  ;;  %v655_v13 = vld [vmem:[%s834_s1 + $0x10] sm:$0xff]  ;;  %v570_v15 = vld [vmem:[%s781_s9 + $0x18] sm:$0xf0]  ;;  %s840_s13 = smov (!%p184_p4, %s743_s13), 1 }
   0xf   : > { %v647_v14 = vld [vmem:[%s781_s9 + $0x14] sm:$0xf]  ;;  %v645_v16 = vld [vmem:[%s781_s9 + $0x4] sm:$0xf]  ;;  %v562_v17 = vld [vmem:[%s781_s9 + $0x8] sm:$0xf0] }
  0x10   : > { %v348_v5 = vsel %vm346_vm0, %v320_v4, 0  ;;  %351 = vmatpush.bf16.msra.mxu0 %v659_v3  ;;  %689 = vmatpush.bf16.msra.mxu2 %v659_v3  ;;  %v573_v18 = vor.u32 %v647_v14, %v570_v15  ;;  %v654_v19 = vld [vmem:[%s834_s1 + $0x8] sm:$0xff]  ;;  %v565_v20 = vor.u32 %v645_v16, %v562_v17  ;;  %v653_v21 = vld [vmem:[%s834_s1] sm:$0xff]  ;;  %v568_v31 = vld [vmem:[%s781_s9 + $0x10] sm:$0xf]  ;;  %s557_s18 = sshll.u32 %s840_s13, 1 }
  0x11   : > { %696 = vmatpush.bf16.msra.mxu3 %v348_v5  ;;  %382 = vmatpush.bf16.msra.mxu1 %v348_v5  ;;  %v560_v22 = vld [vmem:[%s781_s9] sm:$0xf]  ;;  %v646_v23 = vld [vmem:[%s781_s9 + $0x4] sm:$0xf0]  ;;  %v649_v28 = vld [vmem:[%s781_s9 + $0x24] sm:$0xf]  ;;  %s187_s27 = scalar_lea.vmem %s836_s3, %s557_s18 }
  0x12   : > { %v576_v24 = vld [vmem:[%s781_s9 + $0x20] sm:$0xf]  ;;  %v650_v25 = vld [vmem:[%s781_s9 + $0x24] sm:$0xf0]  ;;  %v561_v26 = vor.u32 %v646_v23, %v560_v22  ;;  %v578_v29 = vld [vmem:[%s781_s9 + $0x28] sm:$0xf0] }
  0x13   : > { %v577_v27 = vor.u32 %v650_v25, %v576_v24  ;;  %v581_v30 = vor.u32 %v649_v28, %v578_v29  ;;  %v648_v32 = vld [vmem:[%s781_s9 + $0x14] sm:$0xf0]  ;;  %v584_v33 = vld [vmem:[%s781_s9 + $0x30] sm:$0xf]  ;;  %v651_v37 = vld [vmem:[%s781_s9 + $0x34] sm:$0xf] }
  0x14   : > { %352 = vmatpush.bf16.msra.mxu0 %v658_v7  ;;  %690 = vmatpush.bf16.msra.mxu2 %v658_v7  ;;  %v652_v34 = vld [vmem:[%s781_s9 + $0x34] sm:$0xf0]  ;;  %v569_v35 = vor.u32 %v648_v32, %v568_v31  ;;  %v586_v38 = vld [vmem:[%s781_s9 + $0x38] sm:$0xf0] }
  0x15   : > { %697 = vmatpush.bf16.msra.mxu3 %v664_v6  ;;  %383 = vmatpush.bf16.msra.mxu1 %v664_v6  ;;  %v585_v36 = vor.u32 %v652_v34, %v584_v33  ;;  %v589_v39 = vor.u32 %v651_v37, %v586_v38 }
  0x18   : > { %353 = vmatpush.bf16.msra.mxu0 %v657_v9  ;;  %691 = vmatpush.bf16.msra.mxu2 %v657_v9 }
  0x19   : > { %698 = vmatpush.bf16.msra.mxu3 %v663_v8  ;;  %384 = vmatpush.bf16.msra.mxu1 %v663_v8 }
  0x1c   : > { %354 = vmatpush.bf16.msra.mxu0 %v656_v11  ;;  %692 = vmatpush.bf16.msra.mxu2 %v656_v11 }
  0x1d   : > { %699 = vmatpush.bf16.msra.mxu3 %v662_v10  ;;  %385 = vmatpush.bf16.msra.mxu1 %v662_v10 }
  0x20   : > { %355 = vmatpush.bf16.msra.mxu0 %v655_v13  ;;  %693 = vmatpush.bf16.msra.mxu2 %v655_v13 }
  0x21   : > { %700 = vmatpush.bf16.msra.mxu3 %v661_v12  ;;  %386 = vmatpush.bf16.msra.mxu1 %v661_v12 }
  0x24   : > { %639 = vmatmul.msk.bf16.vlgmr.msra.gmra.mxu3 %vm333_vm1, %v573_v18  ;;  %356 = vmatpush.bf16.msra.mxu0 %v654_v19 }
  0x25   : > { %638 = vmatmul.msk.bf16.vlgmr.msra.gmra.mxu1 %vm333_vm1, %v565_v20  ;;  %694 = vmatpush.bf16.msra.mxu2 %v654_v19 }
  0x28   : > { %357 = vmatpush.bf16.msra.mxu0 %v653_v21 }
  0x29   : > { %695 = vmatpush.bf16.msra.mxu2 %v653_v21 }
  0x2b   : > { %358 = vmatmul.bf16.vlgmr.msra.gmra.mxu0 %v561_v26 }
  0x2c   : > { %368 = vmatmul.bf16.vlgmr.msra.gmra.mxu2 %v577_v27 }
  0x34   : > { %640 = vmatmul.msk.bf16.gmra.mxu3 %vm333_vm1, %v581_v30 }
  0x3b   : > { %363 = vmatmul.bf16.gmra.mxu0 %v569_v35 }
  0x3c   : > { %373 = vmatmul.bf16.gmra.mxu2 %v585_v36 }
  0x44   : > { %641 = vmatmul.msk.bf16.gmra.mxu3 %vm333_vm1, %v589_v39 }
  0xa2   : > { %v388_v40 = vpop.f32.mrf.mxu1 }
  0xa7   : > { %v393_v41 = vpop.f32.mrf.mxu3 }
  0xa8   : > { %v359_v42 = vpop.f32.mrf.mxu0 }
  0xa9   : > { %v389_v47 = vadd.f32 %v388_v40, %v359_v42 }
  0xaa   : > { %v390_v44 = vpop.f32.mrf.mxu1 }
  0xab   : > { %v438_v55 = vmul.f32 %v389_v47, %v389_v47 }
  0xaf   : > { %v395_v43 = vpop.f32.mrf.mxu3  ;;  %v369_v45 = vpop.f32.mrf.mxu2 }
  0xb0   : > { %v361_v46 = vpop.f32.mrf.mxu0 }
  0xb1   : > { %v391_v48 = vadd.f32 %v390_v44, %v361_v46 }
  0xb3   : > { %v668_v49 = vpack.c.bf16 %v391_v48, %v389_v47  ;;  %v439_v54 = vmul.f32 %v391_v48, %v391_v48  ;;  %v424_v57 = vadd.f32 %v391_v48, %v389_v47 }
  0xb5   : > { %669 = vst [vmem:[%s819_s24] sm:$0xff] %v668_v49   ;;  %v446_v62 = vadd.f32 %v439_v54, %v438_v55 }
  0xb7   : > { %v398_v50 = vpop.f32.mrf.mxu3  ;;  %v371_v52 = vpop.f32.mrf.mxu2 }
  0xb8   : > { %v364_v51 = vpop.f32.mrf.mxu0  ;;  %v399_v58 = vadd.f32 %v398_v50, %v369_v45 }
  0xb9   : > { %v394_v53 = vadd.f32 %v393_v41, %v364_v51 }
  0xba   : > { %v442_v9 = vmul.f32 %v399_v58, %v399_v58 }
  0xbb   : > { %v440_v59 = vmul.f32 %v394_v53, %v394_v53  ;;  %v425_v63 = vadd.f32 %v424_v57, %v394_v53 }
  0xbd   : > { %v447_v2 = vadd.f32 %v446_v62, %v440_v59 }
  0xbf   : > { %v400_v56 = vpop.f32.mrf.mxu3  ;;  %v374_v6 = vpop.f32.mrf.mxu2 }
  0xc0   : > { %v401_v60 = vadd.f32 %v400_v56, %v371_v52  ;;  %v366_v61 = vpop.f32.mrf.mxu0 }
  0xc1   : > { %v396_v1 = vadd.f32 %v395_v43, %v366_v61 }
  0xc2   : > { %v678_v0 = vpack.c.bf16 %v401_v60, %v399_v58  ;;  %v443_v13 = vmul.f32 %v401_v60, %v401_v60 }
  0xc3   : > { %v673_v3 = vpack.c.bf16 %v396_v1, %v394_v53  ;;  %v426_v4 = vadd.f32 %v425_v63, %v396_v1  ;;  %v441_v5 = vmul.f32 %v396_v1, %v396_v1 }
  0xc4   : > { %686 = vst [vmem:[%s819_s24 + $0x10] sm:$0xff] %v678_v0  }
  0xc5   : > { %685 = vst [vmem:[%s819_s24 + $0x8] sm:$0xff] %v673_v3   ;;  %v448_v7 = vadd.f32 %v447_v2, %v441_v5  ;;  %v427_v10 = vadd.f32 %v426_v4, %v399_v58 }
  0xc7   : > { %v403_v8 = vpop.f32.mrf.mxu3  ;;  %v449_v11 = vadd.f32 %v448_v7, %v442_v9  ;;  %v428_v14 = vadd.f32 %v427_v10, %v401_v60  ;;  %v376_v17 = vpop.f32.mrf.mxu2 }
  0xc8   : > { %v404_v12 = vadd.f32 %v403_v8, %v374_v6 }
  0xc9   : > { %v450_v16 = vadd.f32 %v449_v11, %v443_v13 }
  0xca   : > { %v444_v15 = vmul.f32 %v404_v12, %v404_v12  ;;  %v429_v19 = vadd.f32 %v428_v14, %v404_v12 }
  0xcc   : > { %v451_v21 = vadd.f32 %v450_v16, %v444_v15 }
  0xcf   : > { %v405_v18 = vpop.f32.mrf.mxu3 }
  0xd0   : > { %v406_v20 = vadd.f32 %v405_v18, %v376_v17 }
  0xd2   : > { %v683_v22 = vpack.c.bf16 %v406_v20, %v404_v12  ;;  %v430_v23 = vadd.f32 %v429_v19, %v406_v20  ;;  %v445_v24 = vmul.f32 %v406_v20, %v406_v20 }
  0xd4   : > { %687 = vst [vmem:[%s819_s24 + $0x18] sm:$0xff] %v683_v22   ;;  %v431_v25 = vrot.slane %v430_v23, 4  ;;  %v452_v26 = vadd.f32 %v451_v21, %v445_v24 }
  0xd6   : > { %v432_v27 = vadd.f32 %v431_v25, %v430_v23  ;;  %v453_v28 = vrot.slane %v452_v26, 4 }
  0xd8   : > { %v433_v29 = vrot.slane %v432_v27, 2  ;;  %v454_v30 = vadd.f32 %v453_v28, %v452_v26 }
  0xda   : > { %v434_v31 = vadd.f32 %v433_v29, %v432_v27  ;;  %v455_v32 = vrot.slane %v454_v30, 2 }
  0xdc   : > { %v435_v33 = vrot.slane %v434_v31, 1  ;;  %v456_v34 = vadd.f32 %v455_v32, %v454_v30 }
  0xde   : > { %v436_v35 = vadd.f32 %v435_v33, %v434_v31  ;;  %v457_v36 = vrot.slane %v456_v34, 1 }
  0xe0   : > { %437 = vst [vmem:[%s187_s27] sm:$0x1] %v436_v35  ;;  %v458_v37 = vadd.f32 %v457_v36, %v456_v34 }
  0xe2   : > { %459 = vst [vmem:[%s187_s27 + $0x1] sm:$0x1] %v458_v37 }
  0xe3 PF: > { %s14_s12 = sadd.s32 1, %s715_s12  }
  0xe4   : > { %p11_p5 = scmp.ge.s32.totalorder %s14_s12, 4  }
  0xe6   :  { %13 = sbr.rel (!%p11_p5) target bundleno = 1 (0x1), region = 70 }

// kernel: _lambda_.14
= control target key start
LH: loop header
LB: loop body
LE: loop exit
PB: predicated region body
PF: predicated region fallthrough
CT: control target
= control target key end

     0   :  { %s567_s15 = smov 0   ;;  %s647_s0 = inlined_call_operand.vmem [shape: bf16[2,5,5,128], index: 0, kind: input, shape index: {}]   ;;  %s648_s1 = inlined_call_operand.vmem [shape: bf16[2,5,5,128], index: 1, kind: input, shape index: {}]   ;;  %s649_s2 = inlined_call_operand.vmem [shape: bf16[2,5,5,128], index: 2, kind: input, shape index: {}]   ;;  %s650_s3 = inlined_call_operand.vmem [shape: bf16[2,5,5,128], index: 3, kind: input, shape index: {}]   ;;  %s651_s4 = inlined_call_operand.vmem [shape: bf16[2,4,4,128], index: 4, kind: output, shape index: {}]  }
   0x1 LB: > { %s499_s16 = sadd.s32 4294967295, %s540_s15   ;;  %p503_p0 = scmp.ge.s32.totalorder %s540_s15, 1  ;;  %s540_s15 = sphi %s567_s15, %s14_s15  }
   0x2   : > { %p192_p1 = scmp.lt.s32.totalorder %s540_s15, 3 }
   0x4   : > { %p193_p2 = pnand %p503_p0, %p192_p1 }
   0x5   : > { %p233_p3 = scmp.lt.s32.totalorder (!%p193_p2), %s499_s16, 1 }
   0x6   : > { %196 = sbr.rel (%p193_p2) target bundleno = 48 (0x30), region = 36 }
   0xb   : > { %s653_s16 = smov (!%p233_p3, %s499_s16), 1 }
   0xc   : > { %s525_s17 = smul.u32 20, %s653_s16  ;;  %s524_s30 = sshll.u32 %s653_s16, 3 }
   0xd   : > { %s635_s7 = scalar_lea.vmem %s651_s4, %s524_s30 }
   0xe   : > { %s581_s20 = scalar_lea.vmem %s647_s0, %s525_s17  ;;  %s586_s23 = scalar_lea.vmem %s648_s1, %s525_s17 }
   0xf   : > { %s591_s26 = scalar_lea.vmem %s649_s2, %s525_s17  ;;  %s596_s29 = scalar_lea.vmem %s650_s3, %s525_s17  ;;  %v258_v0 = vld [vmem:[%s581_s20] sm:$0x3]  ;;  %v510_v9 = vld [vmem:[%s581_s20 + $0x4] sm:$0x3]  ;;  %v519_v30 = vld [vmem:[%s581_s20 + $0x8] sm:$0x7] }
  0x10   : > { %v266_v1 = vld [vmem:[%s586_s23] sm:$0x3]  ;;  %v262_v3 = vunpack.c.l.bf16 %v258_v0  ;;  %v259_v14 = vld [vmem:[%s581_s20 + $0x4] sm:$0x3]  ;;  %v355_v26 = vunpack.c.l.bf16 %v510_v9  ;;  %v260_v35 = vld [vmem:[%s581_s20 + $0x8] sm:$0x3]  ;;  %v381_v52 = vunpack.c.l.bf16 %v519_v30 }
  0x11   : > { %v278_v2 = vld [vmem:[%s581_s20] sm:$0x7]  ;;  %v270_v4 = vunpack.c.l.bf16 %v266_v1  ;;  %v267_v15 = vld [vmem:[%s586_s23 + $0x4] sm:$0x3]  ;;  %v263_v16 = vunpack.c.l.bf16 %v259_v14  ;;  %v268_v36 = vld [vmem:[%s586_s23 + $0x8] sm:$0x3]  ;;  %v264_v39 = vunpack.c.l.bf16 %v260_v35 }
  0x12   : > { %v282_v5 = vunpack.c.l.bf16 %v278_v2  ;;  %v302_v6 = vld [vmem:[%s591_s26] sm:$0x3]  ;;  %v271_v17 = vunpack.c.l.bf16 %v267_v15  ;;  %v279_v18 = vld [vmem:[%s581_s20 + $0x4] sm:$0x7]  ;;  %v272_v40 = vunpack.c.l.bf16 %v268_v36  ;;  %v280_v41 = vld [vmem:[%s581_s20 + $0x8] sm:$0x7] }
  0x13   : > { %v326_v7 = vld [vmem:[%s591_s26] sm:$0x7]  ;;  %v274_v10 = vmax.f32 %v262_v3, %v270_v4  ;;  %v306_v12 = vunpack.c.l.bf16 %v302_v6  ;;  %v303_v19 = vld [vmem:[%s591_s26 + $0x4] sm:$0x3]  ;;  %v283_v24 = vunpack.c.l.bf16 %v279_v18  ;;  %v304_v42 = vld [vmem:[%s591_s26 + $0x8] sm:$0x3]  ;;  %v284_v47 = vunpack.c.l.bf16 %v280_v41 }
  0x14   : > { %v314_v8 = vld [vmem:[%s596_s29] sm:$0x3]  ;;  %v290_v11 = vrot.slane %v282_v5, 1  ;;  %v330_v13 = vunpack.c.l.bf16 %v326_v7  ;;  %v514_v22 = vld [vmem:[%s586_s23 + $0x4] sm:$0x3]  ;;  %v275_v27 = vmax.f32 %v263_v16, %v271_v17  ;;  %v307_v34 = vunpack.c.l.bf16 %v303_v19 }
  0x15   : > { %v318_v21 = vunpack.c.l.bf16 %v314_v8  ;;  %v518_v23 = vld [vmem:[%s581_s20 + $0x4] sm:$0x7]  ;;  %v291_v33 = vrot.slane %v283_v24, 1  ;;  %v368_v37 = vunpack.c.l.bf16 %v514_v22  ;;  %v511_v46 = vld [vmem:[%s581_s20 + $0x8] sm:$0x3]  ;;  %v276_v53 = vmax.f32 %v264_v39, %v272_v40 }
  0x16   : > { %v298_v20 = vmax.f32 %v274_v10, %v290_v11  ;;  %v327_v25 = vld [vmem:[%s591_s26 + $0x4] sm:$0x7]  ;;  %v338_v32 = vrot.slane %v330_v13, 1  ;;  %v380_v38 = vunpack.c.l.bf16 %v518_v23  ;;  %v316_v48 = vld [vmem:[%s596_s29 + $0x8] sm:$0x3]  ;;  %v292_v57 = vrot.slane %v284_v47, 1 }
  0x17   : > { %v315_v28 = vld [vmem:[%s596_s29 + $0x4] sm:$0x3]  ;;  %v331_v29 = vunpack.c.l.bf16 %v327_v25  ;;  %v299_v44 = vmax.f32 %v275_v27, %v291_v33  ;;  %v328_v49 = vld [vmem:[%s591_s26 + $0x8] sm:$0x7]  ;;  %v308_v58 = vunpack.c.l.bf16 %v304_v42  ;;  %v261_v59 = vld [vmem:[%s581_s20 + $0xc] sm:$0x3]  ;;  %v356_v62 = vunpack.c.l.bf16 %v511_v46 }
  0x18   : > { %v310_v31 = vmax.f32 %v298_v20, %v306_v12  ;;  %v319_v45 = vunpack.c.l.bf16 %v315_v28  ;;  %v515_v51 = vld [vmem:[%s586_s23 + $0x8] sm:$0x3]  ;;  %v332_v54 = vunpack.c.l.bf16 %v328_v49  ;;  %v269_v60 = vld [vmem:[%s586_s23 + $0xc] sm:$0x3]  ;;  %v388_v61 = vrot.slane %v380_v38, 1 }
  0x19   : > { %v339_v50 = vrot.slane %v331_v29, 1  ;;  %v311_v56 = vmax.f32 %v299_v44, %v307_v34  ;;  %v320_v63 = vunpack.c.l.bf16 %v316_v48  ;;  %v265_v0 = vunpack.c.l.bf16 %v261_v59  ;;  %v281_v1 = vld [vmem:[%s581_s20 + $0xc] sm:$0x7]  ;;  %v513_v34 = vld [vmem:[%s581_s20 + $0x10] sm:$0x3] }
  0x1a   : > { %v322_v43 = vmax.f32 %v310_v31, %v318_v21  ;;  %v300_v4 = vmax.f32 %v276_v53, %v292_v57  ;;  %v512_v5 = vld [vmem:[%s581_s20 + $0xc] sm:$0x3]  ;;  %v273_v6 = vunpack.c.l.bf16 %v269_v60  ;;  %v369_v9 = vunpack.c.l.bf16 %v515_v51  ;;  %v521_v35 = vld [vmem:[%s581_s20 + $0x10] sm:$0x7] }
  0x1b   : > { %v323_v3 = vmax.f32 %v311_v56, %v319_v45  ;;  %v305_v7 = vld [vmem:[%s591_s26 + $0xc] sm:$0x3]  ;;  %v389_v10 = vrot.slane %v381_v52, 1  ;;  %v340_v11 = vrot.slane %v332_v54, 1  ;;  %v285_v13 = vunpack.c.l.bf16 %v281_v1  ;;  %v517_v41 = vld [vmem:[%s586_s23 + $0x10] sm:$0x3] }
  0x1c   : > { %v346_v55 = vmax.f32 %v322_v43, %v338_v32  ;;  %v329_v8 = vld [vmem:[%s591_s26 + $0xc] sm:$0x7]  ;;  %v312_v16 = vmax.f32 %v300_v4, %v308_v58  ;;  %v277_v17 = vmax.f32 %v265_v0, %v273_v6  ;;  %v357_v19 = vunpack.c.l.bf16 %v512_v5 }
  0x1d   : > { %v520_v12 = vld [vmem:[%s581_s20 + $0xc] sm:$0x7]  ;;  %v347_v15 = vmax.f32 %v323_v3, %v339_v50  ;;  %v293_v21 = vrot.slane %v285_v13, 1  ;;  %v309_v22 = vunpack.c.l.bf16 %v305_v7  ;;  %v333_v23 = vunpack.c.l.bf16 %v329_v8 }
  0x1e   : > { %v359_v2 = vmax.f32 %v346_v55, %v355_v26  ;;  %v317_v18 = vld [vmem:[%s596_s29 + $0xc] sm:$0x3]  ;;  %v324_v26 = vmax.f32 %v312_v16, %v320_v63  ;;  %v382_v27 = vunpack.c.l.bf16 %v520_v12  ;;  %v358_v43 = vunpack.c.l.bf16 %v513_v34 }
  0x1f   : > { %v516_v20 = vld [vmem:[%s586_s23 + $0xc] sm:$0x3]  ;;  %v360_v25 = vmax.f32 %v347_v15, %v356_v62  ;;  %v301_v28 = vmax.f32 %v277_v17, %v293_v21  ;;  %v321_v29 = vunpack.c.l.bf16 %v317_v18  ;;  %v383_v44 = vunpack.c.l.bf16 %v521_v35 }
  0x20   : > { %v372_v14 = vmax.f32 %v359_v2, %v368_v37  ;;  %v348_v32 = vmax.f32 %v324_v26, %v340_v11  ;;  %v370_v33 = vunpack.c.l.bf16 %v516_v20  ;;  %v341_v37 = vrot.slane %v333_v23, 1 }
  0x21   : > { %v373_v31 = vmax.f32 %v360_v25, %v369_v9  ;;  %v313_v36 = vmax.f32 %v301_v28, %v309_v22  ;;  %v390_v40 = vrot.slane %v382_v27, 1  ;;  %v371_v48 = vunpack.c.l.bf16 %v517_v41 }
  0x22   : > { %v396_v24 = vmax.f32 %v372_v14, %v388_v61  ;;  %v361_v39 = vmax.f32 %v348_v32, %v357_v19  ;;  %v391_v51 = vrot.slane %v383_v44, 1 }
  0x23   : > { %v397_v38 = vmax.f32 %v373_v31, %v389_v10  ;;  %v325_v42 = vmax.f32 %v313_v36, %v321_v29 }
  0x24   : > { %v400_v30 = vpack.c.bf16 %v396_v24, %v396_v24  ;;  %v374_v46 = vmax.f32 %v361_v39, %v370_v33 }
  0x25   : > { %v401_v45 = vpack.c.bf16 %v397_v38, %v397_v38  ;;  %v349_v47 = vmax.f32 %v325_v42, %v341_v37 }
  0x26   : > { %404 = vst [vmem:[%s635_s7] sm:$0x3] %v400_v30  ;;  %v398_v49 = vmax.f32 %v374_v46, %v390_v40 }
  0x27   : > { %405 = vst [vmem:[%s635_s7 + $0x2] sm:$0x3] %v401_v45  ;;  %v362_v50 = vmax.f32 %v349_v47, %v358_v43 }
  0x28   : > { %v402_v52 = vpack.c.bf16 %v398_v49, %v398_v49 }
  0x29   : > { %v375_v53 = vmax.f32 %v362_v50, %v371_v48 }
  0x2a   : > { %406 = vst [vmem:[%s635_s7 + $0x4] sm:$0x3] %v402_v52 }
  0x2b   : > { %v399_v54 = vmax.f32 %v375_v53, %v391_v51 }
  0x2d   : > { %v403_v55 = vpack.c.bf16 %v399_v54, %v399_v54 }
  0x2f   : > { %407 = vst [vmem:[%s635_s7 + $0x6] sm:$0x3] %v403_v55 }
  0x30 PF: > { %s14_s15 = sadd.s32 1, %s540_s15  }
  0x31   : > { %p11_p4 = scmp.ge.s32.totalorder %s14_s15, 4  }
  0x33   :  { %13 = sbr.rel (!%p11_p4) target bundleno = 1 (0x1), region = 77 }

// kernel: _lambda_.16
= control target key start
LH: loop header
LB: loop body
LE: loop exit
PB: predicated region body
PF: predicated region fallthrough
CT: control target
= control target key end

     0   :  { %s274_s9 = smov 0   ;;  %s291_s0 = inlined_call_operand.vmem [shape: bf16[32,128], index: 0, kind: input, shape index: {}]   ;;  %s292_s1 = inlined_call_operand.vmem [shape: f32[2,128], index: 1, kind: input, shape index: {}]   ;;  %s293_s2 = inlined_call_operand.vmem [shape: bf16[32,128], index: 2, kind: output, shape index: {}]  }
   0x1 LB: > { %s221_s10 = sadd.s32 4294967295, %s257_s9   ;;  %p225_p0 = scmp.ge.s32.totalorder %s257_s9, 1  ;;  %s257_s9 = sphi %s274_s9, %s12_s9  }
   0x2   : > { %p113_p1 = scmp.lt.s32.totalorder %s257_s9, 3 }
   0x4   : > { %p114_p2 = pnand %p225_p0, %p113_p1 }
   0x5   : > { %s226_s11 = sshll.u32 (!%p114_p2), %s221_s10, 1 }
   0x6   : > { %117 = sbr.rel (%p114_p2) target bundleno = 26 (0x1a), region = 28  ;;  %p136_p3 = scmp.lt.s32.totalorder (!%p114_p2), %s226_s11, 3 }
   0xb   : > { %s295_s11 = smov (!%p136_p3, %s226_s11), 3  ;;  %v249_v0 = vld [vmem:[%s292_s1] ss:$0 sm:$0xff]  ;;  %v250_v4 = vld [vmem:[%s292_s1 + $0x1] ss:$0 sm:$0xff] }
   0xc   : > { %s227_s12 = sshll.u32 %s295_s11, 2 }
   0xd   : > { %s139_s15 = scalar_lea.vmem %s291_s0, %s227_s12  ;;  %s145_s22 = scalar_lea.vmem %s293_s2, %s227_s12 }
   0xe   : > { %v233_v1 = vld [vmem:[%s139_s15] sm:$0xff]  }
   0xf   : > { %v234_v2 = vunpack.c.l.bf16 %v233_v1  ;;  %v235_v3 = vunpack.c.h.bf16 %v233_v1 }
  0x11   : > { %v153_v5 = vmul.f32 %v249_v0, %v234_v2  ;;  %v154_v6 = vmul.f32 %v249_v0, %v235_v3 }
  0x13   : > { %v157_v7 = vadd.f32 %v250_v4, %v153_v5  ;;  %v158_v8 = vadd.f32 %v250_v4, %v154_v6 }
  0x15   : > { %v159_v9 = vmax.f32 %v157_v7, 0.0  ;;  %v160_v10 = vmax.f32 %v158_v8, 0.0 }
  0x17   : > { %v239_v11 = vpack.c.bf16 %v160_v10, %v159_v9 }
  0x19   : > { %240 = vst [vmem:[%s145_s22] sm:$0xff] %v239_v11  }
  0x1a PF: > { %s12_s9 = sadd.s32 1, %s257_s9  }
  0x1b   : > { %p9_p4 = scmp.ge.s32.totalorder %s12_s9, 4  }
  0x1d   :  { %11 = sbr.rel (!%p9_p4) target bundleno = 1 (0x1), region = 58 }

// kernel: _lambda_.18
= control target key start
LH: loop header
LB: loop body
LE: loop exit
PB: predicated region body
PF: predicated region fallthrough
CT: control target
= control target key end

     0   :  { %s362_s12 = smov 0   ;;  %s394_s0 = inlined_call_operand.vmem [shape: bf16[32,128], index: 0, kind: input, shape index: {}]   ;;  %s395_s1 = inlined_call_operand.vmem [shape: bf16[32,128], index: 1, kind: input, shape index: {}]   ;;  %s396_s2 = inlined_call_operand.vmem [shape: f32[4,128], index: 2, kind: input, shape index: {}]   ;;  %s397_s3 = inlined_call_operand.vmem [shape: bf16[32,128], index: 3, kind: output, shape index: {}]  }
   0x1 LB: > { %s296_s13 = sadd.s32 4294967295, %s340_s12   ;;  %p300_p0 = scmp.ge.s32.totalorder %s340_s12, 1  ;;  %s340_s12 = sphi %s362_s12, %s13_s12  }
   0x2   : > { %p149_p1 = scmp.lt.s32.totalorder %s340_s12, 3 }
   0x4   : > { %p150_p2 = pnand %p300_p0, %p149_p1 }
   0x5   : > { %s301_s14 = sshll.u32 (!%p150_p2), %s296_s13, 1 }
   0x6   : > { %153 = sbr.rel (%p150_p2) target bundleno = 30 (0x1e), region = 32  ;;  %p179_p3 = scmp.lt.s32.totalorder (!%p150_p2), %s301_s14, 3 }
   0xb   : > { %s399_s14 = smov (!%p179_p3, %s301_s14), 3  ;;  %v330_v0 = vld [vmem:[%s396_s2] ss:$0 sm:$0xff]  ;;  %v332_v1 = vld [vmem:[%s396_s2 + $0x2] ss:$0 sm:$0xff] }
   0xc   : > { %s302_s15 = sshll.u32 %s399_s14, 2  ;;  %v331_v8 = vld [vmem:[%s396_s2 + $0x1] ss:$0 sm:$0xff]  ;;  %v333_v15 = vld [vmem:[%s396_s2 + $0x3] ss:$0 sm:$0xff] }
   0xd   : > { %s182_s18 = scalar_lea.vmem %s394_s0, %s302_s15  ;;  %s188_s21 = scalar_lea.vmem %s395_s1, %s302_s15 }
   0xe   : > { %v310_v2 = vld [vmem:[%s182_s18] sm:$0xff]   ;;  %s194_s5 = scalar_lea.vmem %s397_s3, %s302_s15 }
   0xf   : > { %v314_v3 = vld [vmem:[%s188_s21] sm:$0xff]   ;;  %v311_v4 = vunpack.c.l.bf16 %v310_v2  ;;  %v312_v5 = vunpack.c.h.bf16 %v310_v2 }
  0x10   : > { %v315_v6 = vunpack.c.l.bf16 %v314_v3  ;;  %v316_v7 = vunpack.c.h.bf16 %v314_v3 }
  0x11   : > { %v206_v9 = vmul.f32 %v330_v0, %v311_v4  ;;  %v207_v10 = vmul.f32 %v330_v0, %v312_v5 }
  0x12   : > { %v214_v11 = vmul.f32 %v332_v1, %v315_v6  ;;  %v215_v12 = vmul.f32 %v332_v1, %v316_v7 }
  0x13   : > { %v210_v13 = vadd.f32 %v331_v8, %v206_v9  ;;  %v211_v14 = vadd.f32 %v331_v8, %v207_v10 }
  0x15   : > { %v216_v16 = vadd.f32 %v214_v11, %v210_v13  ;;  %v217_v17 = vadd.f32 %v215_v12, %v211_v14 }
  0x17   : > { %v220_v18 = vadd.f32 %v333_v15, %v216_v16  ;;  %v221_v19 = vadd.f32 %v333_v15, %v217_v17 }
  0x19   : > { %v222_v20 = vmax.f32 %v220_v18, 0.0  ;;  %v223_v21 = vmax.f32 %v221_v19, 0.0 }
  0x1b   : > { %v320_v22 = vpack.c.bf16 %v223_v21, %v222_v20 }
  0x1d   : > { %321 = vst [vmem:[%s194_s5] sm:$0xff] %v320_v22  }
  0x1e PF: > { %s13_s12 = sadd.s32 1, %s340_s12  }
  0x1f   : > { %p10_p4 = scmp.ge.s32.totalorder %s13_s12, 4  }
  0x21   :  { %12 = sbr.rel (!%p10_p4) target bundleno = 1 (0x1), region = 65 }

// kernel: _lambda_.15
= control target key start
LH: loop header
LB: loop body
LE: loop exit
PB: predicated region body
PF: predicated region fallthrough
CT: control target
= control target key end

     0   :  { %s1514_s12 = smov 0   ;;  %s1779_s0 = inlined_call_operand.vmem [shape: bf16[32,1152], index: 0, kind: input, shape index: {}]   ;;  %s1780_s1 = inlined_call_operand.vmem [shape: bf16[1152,128], index: 1, kind: input, shape index: {}]   ;;  %s1781_s2 = inlined_call_operand.vmem [shape: bf16[32,128], index: 2, kind: output, shape index: {0}]   ;;  %s1782_s3 = inlined_call_operand.vmem [shape: f32[2,2,128], index: 3, kind: output, shape index: {1}]  }
   0x1 LB: > { %s1520_s13 = sadd.s32 4294967295, %s1492_s12   ;;  %p1059_p0 = scmp.ge.s32.totalorder %s1492_s12, 1  ;;  %s1492_s12 = sphi %s1514_s12, %s14_s12  }
   0x2   : > { %p142_p1 = scmp.lt.s32.totalorder %s1492_s12, 3 }
   0x4   : > { %p143_p2 = pnand %p1059_p0, %p142_p1 }
   0x5   : > { %s1060_s11 = sshll.u32 (!%p143_p2), %s1520_s13, 1  ;;  %p184_p4 = scmp.lt.s32.totalorder (!%p143_p2), %s1520_s13, 1 }
   0x6   : > { %146 = sbr.rel (%p143_p2) target bundleno = 260 (0x104), region = 28  ;;  %p172_p3 = scmp.lt.s32.totalorder (!%p143_p2), %s1060_s11, 3 }
   0xb   : > { %v1407_v0 = vld [vmem:[%s1780_s1 + $0x38] sm:$0xff]  ;;  %v1406_v4 = vld [vmem:[%s1780_s1 + $0x30] sm:$0xff]  ;;  %v1405_v8 = vld [vmem:[%s1780_s1 + $0x28] sm:$0xff]  ;;  %s1784_s11 = smov (!%p172_p3, %s1060_s11), 3  ;;  %s1786_s13 = smov (!%p184_p4, %s1520_s13), 1 }
   0xc   : > { %v1423_v1 = vld [vmem:[%s1780_s1 + $0xb8] sm:$0xff]  ;;  %820 = vmatpush.bf16.msra.mxu0 %v1407_v0  ;;  %v1422_v5 = vld [vmem:[%s1780_s1 + $0xb0] sm:$0xff]  ;;  %v1421_v9 = vld [vmem:[%s1780_s1 + $0xa8] sm:$0xff]  ;;  %s1477_s14 = smul.u32 36, %s1784_s11 }
   0xd   : > { %v1415_v2 = vld [vmem:[%s1780_s1 + $0x78] sm:$0xff]  ;;  %848 = vmatpush.bf16.msra.mxu2 %v1423_v1  ;;  %v1414_v6 = vld [vmem:[%s1780_s1 + $0x70] sm:$0xff]  ;;  %v1413_v10 = vld [vmem:[%s1780_s1 + $0x68] sm:$0xff] }
   0xe   : > { %v1431_v3 = vld [vmem:[%s1780_s1 + $0xf8] sm:$0xff]  ;;  %834 = vmatpush.bf16.msra.mxu1 %v1415_v2  ;;  %v1430_v7 = vld [vmem:[%s1780_s1 + $0xf0] sm:$0xff]  ;;  %v1429_v11 = vld [vmem:[%s1780_s1 + $0xe8] sm:$0xff]  ;;  %s1615_s25 = scalar_lea.vmem %s1779_s0, %s1477_s14 }
   0xf   : > { %862 = vmatpush.bf16.msra.mxu3 %v1431_v3  ;;  %v1404_v12 = vld [vmem:[%s1780_s1 + $0x20] sm:$0xff]  ;;  %v1403_v16 = vld [vmem:[%s1780_s1 + $0x18] sm:$0xff]  ;;  %v1402_v20 = vld [vmem:[%s1780_s1 + $0x10] sm:$0xff] }
  0x10   : > { %821 = vmatpush.bf16.msra.mxu0 %v1406_v4  ;;  %v1420_v13 = vld [vmem:[%s1780_s1 + $0xa0] sm:$0xff]  ;;  %v1419_v17 = vld [vmem:[%s1780_s1 + $0x98] sm:$0xff]  ;;  %v1418_v21 = vld [vmem:[%s1780_s1 + $0x90] sm:$0xff] }
  0x11   : > { %849 = vmatpush.bf16.msra.mxu2 %v1422_v5  ;;  %v1412_v14 = vld [vmem:[%s1780_s1 + $0x60] sm:$0xff]  ;;  %v1411_v18 = vld [vmem:[%s1780_s1 + $0x58] sm:$0xff]  ;;  %v1410_v22 = vld [vmem:[%s1780_s1 + $0x50] sm:$0xff] }
  0x12   : > { %835 = vmatpush.bf16.msra.mxu1 %v1414_v6  ;;  %v1428_v15 = vld [vmem:[%s1780_s1 + $0xe0] sm:$0xff]  ;;  %v1427_v19 = vld [vmem:[%s1780_s1 + $0xd8] sm:$0xff]  ;;  %v1426_v23 = vld [vmem:[%s1780_s1 + $0xd0] sm:$0xff] }
  0x13   : > { %863 = vmatpush.bf16.msra.mxu3 %v1430_v7  ;;  %v1401_v24 = vld [vmem:[%s1780_s1 + $0x8] sm:$0xff]  ;;  %v1400_v28 = vld [vmem:[%s1780_s1] sm:$0xff]  ;;  %v1439_v30 = vld [vmem:[%s1780_s1 + $0x138] sm:$0xff] }
  0x14   : > { %822 = vmatpush.bf16.msra.mxu0 %v1405_v8  ;;  %v1417_v25 = vld [vmem:[%s1780_s1 + $0x88] sm:$0xff]  ;;  %v1416_v29 = vld [vmem:[%s1780_s1 + $0x80] sm:$0xff]  ;;  %v1455_v31 = vld [vmem:[%s1780_s1 + $0x1b8] sm:$0xff] }
  0x15   : > { %850 = vmatpush.bf16.msra.mxu2 %v1421_v9  ;;  %v1409_v26 = vld [vmem:[%s1780_s1 + $0x48] sm:$0xff]  ;;  %v1408_v32 = vld [vmem:[%s1780_s1 + $0x40] sm:$0xff]  ;;  %v1447_v38 = vld [vmem:[%s1780_s1 + $0x178] sm:$0xff] }
  0x16   : > { %836 = vmatpush.bf16.msra.mxu1 %v1413_v10  ;;  %v1425_v27 = vld [vmem:[%s1780_s1 + $0xc8] sm:$0xff]  ;;  %v1424_v33 = vld [vmem:[%s1780_s1 + $0xc0] sm:$0xff]  ;;  %v1463_v39 = vld [vmem:[%s1780_s1 + $0x1f8] sm:$0xff] }
  0x17   : > { %864 = vmatpush.bf16.msra.mxu3 %v1429_v11  ;;  %v1067_v34 = vld [vmem:[%s1615_s25] sm:$0xf]  ;;  %v1395_v35 = vld [vmem:[%s1615_s25 + $0x20] sm:$0xf0]  ;;  %v1075_v36 = vld [vmem:[%s1615_s25 + $0x8] sm:$0xf] }
  0x18   : > { %823 = vmatpush.bf16.msra.mxu0 %v1404_v12  ;;  %v1396_v37 = vld [vmem:[%s1615_s25 + $0x28] sm:$0xf0]  ;;  %v1391_v40 = vld [vmem:[%s1615_s25 + $0x4] sm:$0xf]  ;;  %v1069_v41 = vld [vmem:[%s1615_s25 + $0x24] sm:$0xf0]  ;;  %v1068_v44 = vor.u32 %v1395_v35, %v1067_v34 }
  0x19   : > { %851 = vmatpush.bf16.msra.mxu2 %v1420_v13  ;;  %v1392_v42 = vld [vmem:[%s1615_s25 + $0xc] sm:$0xf]  ;;  %v1077_v43 = vld [vmem:[%s1615_s25 + $0x2c] sm:$0xf0]  ;;  %v1076_v45 = vor.u32 %v1396_v37, %v1075_v36  ;;  %v1072_v48 = vor.u32 %v1391_v40, %v1069_v41  ;;  %v1436_v56 = vld [vmem:[%s1780_s1 + $0x120] sm:$0xff] }
  0x1a   : > { %837 = vmatpush.bf16.msra.mxu1 %v1412_v14  ;;  %v1438_v46 = vld [vmem:[%s1780_s1 + $0x130] sm:$0xff]  ;;  %v1080_v49 = vor.u32 %v1392_v42, %v1077_v43  ;;  %v1437_v52 = vld [vmem:[%s1780_s1 + $0x128] sm:$0xff]  ;;  %v1452_v57 = vld [vmem:[%s1780_s1 + $0x1a0] sm:$0xff] }
  0x1b   : > { %865 = vmatpush.bf16.msra.mxu3 %v1428_v15  ;;  %v1454_v47 = vld [vmem:[%s1780_s1 + $0x1b0] sm:$0xff]  ;;  %v1453_v53 = vld [vmem:[%s1780_s1 + $0x1a8] sm:$0xff]  ;;  %v1444_v58 = vld [vmem:[%s1780_s1 + $0x160] sm:$0xff] }
  0x1c   : > { %824 = vmatpush.bf16.msra.mxu0 %v1403_v16  ;;  %v1446_v50 = vld [vmem:[%s1780_s1 + $0x170] sm:$0xff]  ;;  %v1445_v54 = vld [vmem:[%s1780_s1 + $0x168] sm:$0xff]  ;;  %v1460_v59 = vld [vmem:[%s1780_s1 + $0x1e0] sm:$0xff] }
  0x1d   : > { %852 = vmatpush.bf16.msra.mxu2 %v1419_v17  ;;  %v1462_v51 = vld [vmem:[%s1780_s1 + $0x1f0] sm:$0xff]  ;;  %v1461_v55 = vld [vmem:[%s1780_s1 + $0x1e8] sm:$0xff]  ;;  %v1435_v60 = vld [vmem:[%s1780_s1 + $0x118] sm:$0xff] }
  0x1e   : > { %838 = vmatpush.bf16.msra.mxu1 %v1411_v18  ;;  %v1451_v61 = vld [vmem:[%s1780_s1 + $0x198] sm:$0xff]  ;;  %v1434_v0 = vld [vmem:[%s1780_s1 + $0x110] sm:$0xff]  ;;  %v1433_v4 = vld [vmem:[%s1780_s1 + $0x108] sm:$0xff] }
  0x1f   : > { %866 = vmatpush.bf16.msra.mxu3 %v1427_v19  ;;  %v1443_v62 = vld [vmem:[%s1780_s1 + $0x158] sm:$0xff]  ;;  %v1450_v1 = vld [vmem:[%s1780_s1 + $0x190] sm:$0xff]  ;;  %v1449_v5 = vld [vmem:[%s1780_s1 + $0x188] sm:$0xff] }
  0x20   : > { %825 = vmatpush.bf16.msra.mxu0 %v1402_v20  ;;  %v1459_v63 = vld [vmem:[%s1780_s1 + $0x1d8] sm:$0xff]  ;;  %v1442_v2 = vld [vmem:[%s1780_s1 + $0x150] sm:$0xff]  ;;  %v1441_v6 = vld [vmem:[%s1780_s1 + $0x148] sm:$0xff] }
  0x21   : > { %853 = vmatpush.bf16.msra.mxu2 %v1418_v21  ;;  %v1458_v3 = vld [vmem:[%s1780_s1 + $0x1d0] sm:$0xff]  ;;  %v1457_v7 = vld [vmem:[%s1780_s1 + $0x1c8] sm:$0xff]  ;;  %v1432_v8 = vld [vmem:[%s1780_s1 + $0x100] sm:$0xff] }
  0x22   : > { %839 = vmatpush.bf16.msra.mxu1 %v1410_v22  ;;  %v1448_v9 = vld [vmem:[%s1780_s1 + $0x180] sm:$0xff]  ;;  %v1471_v10 = vld [vmem:[%s1780_s1 + $0x238] sm:$0xff]  ;;  %v1083_v11 = vld [vmem:[%s1615_s25 + $0x10] sm:$0xf] }
  0x23   : > { %867 = vmatpush.bf16.msra.mxu3 %v1426_v23  ;;  %v1397_v12 = vld [vmem:[%s1615_s25 + $0x30] sm:$0xf0]  ;;  %v1091_v13 = vld [vmem:[%s1615_s25 + $0x18] sm:$0xf]  ;;  %v1398_v14 = vld [vmem:[%s1615_s25 + $0x38] sm:$0xf0] }
  0x24   : > { %826 = vmatpush.bf16.msra.mxu0 %v1401_v24  ;;  %v1440_v15 = vld [vmem:[%s1780_s1 + $0x140] sm:$0xff]  ;;  %v1393_v17 = vld [vmem:[%s1615_s25 + $0x14] sm:$0xf]  ;;  %v1085_v18 = vld [vmem:[%s1615_s25 + $0x34] sm:$0xf0]  ;;  %v1084_v21 = vor.u32 %v1397_v12, %v1083_v11  ;;  %v1092_v22 = vor.u32 %v1398_v14, %v1091_v13 }
  0x25   : > { %854 = vmatpush.bf16.msra.mxu2 %v1417_v25  ;;  %v1456_v16 = vld [vmem:[%s1780_s1 + $0x1c0] sm:$0xff]  ;;  %v1394_v19 = vld [vmem:[%s1615_s25 + $0x1c] sm:$0xf]  ;;  %v1088_v23 = vor.u32 %v1393_v17, %v1085_v18  ;;  %v1470_v25 = vld [vmem:[%s1780_s1 + $0x230] sm:$0xff] }
  0x26   : > { %840 = vmatpush.bf16.msra.mxu1 %v1409_v26  ;;  %v1093_v20 = vld [vmem:[%s1615_s25 + $0x3c] sm:$0xf0]  ;;  %v1469_v26 = vld [vmem:[%s1780_s1 + $0x228] sm:$0xff] }
  0x27   : > { %868 = vmatpush.bf16.msra.mxu3 %v1425_v27  ;;  %v1096_v24 = vor.u32 %v1394_v19, %v1093_v20  ;;  %v1468_v27 = vld [vmem:[%s1780_s1 + $0x220] sm:$0xff] }
  0x28   : > { %827 = vmatpush.bf16.msra.mxu0 %v1400_v28  ;;  %v1467_v28 = vld [vmem:[%s1780_s1 + $0x218] sm:$0xff] }
  0x29   : > { %855 = vmatpush.bf16.msra.mxu2 %v1416_v29  ;;  %v1466_v29 = vld [vmem:[%s1780_s1 + $0x210] sm:$0xff] }
  0x2a   : > { %841 = vmatpush.bf16.msra.mxu1 %v1408_v32  ;;  %v1099_v32 = vld [vmem:[%s1615_s25 + $0x20] sm:$0xf] }
  0x2b   : > { %869 = vmatpush.bf16.msra.mxu3 %v1424_v33  ;;  %828 = vmatmul.bf16.vlgmr.msra.gmra.mxu0 %v1068_v44  ;;  %v1399_v33 = vld [vmem:[%s1615_s25 + $0x40] sm:$0xf0]  ;;  %s1063_s25 = sshll.u32 %s1784_s11, 2  ;;  %s1064_s11 = sshll.u32 %s1786_s13, 1 }
  0x2c   : > { %876 = vmatpush.bf16.msrb.mxu0 %v1439_v30  ;;  %856 = vmatmul.bf16.vlgmr.msra.gmra.mxu2 %v1076_v45  ;;  %v1465_v30 = vld [vmem:[%s1780_s1 + $0x208] sm:$0xff]  ;;  %v1100_v34 = vor.u32 %v1399_v33, %v1099_v32  ;;  %s182_s23 = scalar_lea.vmem %s1781_s2, %s1063_s25  ;;  %s187_s27 = scalar_lea.vmem %s1782_s3, %s1064_s11 }
  0x2d   : > { %904 = vmatpush.bf16.msrb.mxu2 %v1455_v31  ;;  %842 = vmatmul.bf16.vlgmr.msra.gmra.mxu1 %v1072_v48  ;;  %v1464_v31 = vld [vmem:[%s1780_s1 + $0x200] sm:$0xff] }
  0x2e   : > { %890 = vmatpush.bf16.msrb.mxu1 %v1447_v38  ;;  %870 = vmatmul.bf16.vlgmr.msra.gmra.mxu3 %v1080_v49 }
  0x2f   : > { %918 = vmatpush.bf16.msrb.mxu3 %v1463_v39 }
  0x30   : > { %877 = vmatpush.bf16.msrb.mxu0 %v1438_v46 }
  0x31   : > { %905 = vmatpush.bf16.msrb.mxu2 %v1454_v47 }
  0x32   : > { %891 = vmatpush.bf16.msrb.mxu1 %v1446_v50 }
  0x33   : > { %919 = vmatpush.bf16.msrb.mxu3 %v1462_v51 }
  0x34   : > { %878 = vmatpush.bf16.msrb.mxu0 %v1437_v52 }
  0x35   : > { %906 = vmatpush.bf16.msrb.mxu2 %v1453_v53 }
  0x36   : > { %892 = vmatpush.bf16.msrb.mxu1 %v1445_v54 }
  0x37   : > { %920 = vmatpush.bf16.msrb.mxu3 %v1461_v55 }
  0x38   : > { %879 = vmatpush.bf16.msrb.mxu0 %v1436_v56 }
  0x39   : > { %907 = vmatpush.bf16.msrb.mxu2 %v1452_v57 }
  0x3a   : > { %893 = vmatpush.bf16.msrb.mxu1 %v1444_v58 }
  0x3b   : > { %921 = vmatpush.bf16.msrb.mxu3 %v1460_v59 }
  0x3c   : > { %880 = vmatpush.bf16.msrb.mxu0 %v1435_v60 }
  0x3d   : > { %908 = vmatpush.bf16.msrb.mxu2 %v1451_v61 }
  0x3e   : > { %894 = vmatpush.bf16.msrb.mxu1 %v1443_v62 }
  0x3f   : > { %922 = vmatpush.bf16.msrb.mxu3 %v1459_v63 }
  0x40   : > { %881 = vmatpush.bf16.msrb.mxu0 %v1434_v0 }
  0x41   : > { %909 = vmatpush.bf16.msrb.mxu2 %v1450_v1 }
  0x42   : > { %895 = vmatpush.bf16.msrb.mxu1 %v1442_v2 }
  0x43   : > { %923 = vmatpush.bf16.msrb.mxu3 %v1458_v3 }
  0x44   : > { %882 = vmatpush.bf16.msrb.mxu0 %v1433_v4 }
  0x45   : > { %910 = vmatpush.bf16.msrb.mxu2 %v1449_v5 }
  0x46   : > { %896 = vmatpush.bf16.msrb.mxu1 %v1441_v6 }
  0x47   : > { %924 = vmatpush.bf16.msrb.mxu3 %v1457_v7 }
  0x48   : > { %883 = vmatpush.bf16.msrb.mxu0 %v1432_v8 }
  0x49   : > { %911 = vmatpush.bf16.msrb.mxu2 %v1448_v9 }
  0x4a   : > { %897 = vmatpush.bf16.msrb.mxu1 %v1440_v15 }
  0x4b   : > { %925 = vmatpush.bf16.msrb.mxu3 %v1456_v16  ;;  %884 = vmatmul.bf16.vlgmr.msrb.gmra.mxu0 %v1084_v21 }
  0x4c   : > { %932 = vmatpush.bf16.msra.mxu0 %v1471_v10  ;;  %912 = vmatmul.bf16.vlgmr.msrb.gmra.mxu2 %v1092_v22 }
  0x4d   : > { %898 = vmatmul.bf16.vlgmr.msrb.gmra.mxu1 %v1088_v23 }
  0x4e   : > { %926 = vmatmul.bf16.vlgmr.msrb.gmra.mxu3 %v1096_v24 }
  0x50   : > { %933 = vmatpush.bf16.msra.mxu0 %v1470_v25 }
  0x54   : > { %934 = vmatpush.bf16.msra.mxu0 %v1469_v26 }
  0x58   : > { %935 = vmatpush.bf16.msra.mxu0 %v1468_v27 }
  0x5c   : > { %936 = vmatpush.bf16.msra.mxu0 %v1467_v28 }
  0x60   : > { %937 = vmatpush.bf16.msra.mxu0 %v1466_v29 }
  0x64   : > { %938 = vmatpush.bf16.msra.mxu0 %v1465_v30 }
  0x68   : > { %939 = vmatpush.bf16.msra.mxu0 %v1464_v31 }
  0x6b   : > { %940 = vmatmul.bf16.vlgmr.msra.gmra.mxu0 %v1100_v34 }
  0xa8   : > { %v829_v35 = vpop.f32.mrf.mxu0 }
  0xaa   : > { %v843_v36 = vpop.f32.mrf.mxu1 }
  0xab   : > { %v844_v42 = vadd.f32 %v843_v36, %v829_v35 }
  0xaf   : > { %v857_v37 = vpop.f32.mrf.mxu2 }
  0xb0   : > { %v831_v38 = vpop.f32.mrf.mxu0  ;;  %v858_v45 = vadd.f32 %v857_v37, %v844_v42 }
  0xb1   : > { %v871_v39 = vpop.f32.mrf.mxu3 }
  0xb2   : > { %v845_v40 = vpop.f32.mrf.mxu1  ;;  %v872_v48 = vadd.f32 %v871_v39, %v858_v45 }
  0xb3   : > { %v846_v46 = vadd.f32 %v845_v40, %v831_v38 }
  0xb7   : > { %v859_v41 = vpop.f32.mrf.mxu2 }
  0xb8   : > { %v860_v50 = vadd.f32 %v859_v41, %v846_v46 }
  0xb9   : > { %v873_v44 = vpop.f32.mrf.mxu3 }
  0xba   : > { %v874_v54 = vadd.f32 %v873_v44, %v860_v50 }
  0xc8   : > { %v885_v43 = vpop.f32.mrf.mxu0 }
  0xc9   : > { %v886_v52 = vadd.f32 %v885_v43, %v872_v48 }
  0xca   : > { %v899_v47 = vpop.f32.mrf.mxu1 }
  0xcb   : > { %v900_v55 = vadd.f32 %v899_v47, %v886_v52 }
  0xcf   : > { %v913_v49 = vpop.f32.mrf.mxu2 }
  0xd0   : > { %v887_v51 = vpop.f32.mrf.mxu0  ;;  %v914_v60 = vadd.f32 %v913_v49, %v900_v55 }
  0xd1   : > { %v927_v53 = vpop.f32.mrf.mxu3  ;;  %v888_v56 = vadd.f32 %v887_v51, %v874_v54 }
  0xd2   : > { %v901_v57 = vpop.f32.mrf.mxu1  ;;  %v928_v0 = vadd.f32 %v927_v53, %v914_v60 }
  0xd3   : > { %v902_v61 = vadd.f32 %v901_v57, %v888_v56 }
  0xd7   : > { %v915_v58 = vpop.f32.mrf.mxu2 }
  0xd8   : > { %v916_v62 = vadd.f32 %v915_v58, %v902_v61 }
  0xd9   : > { %v929_v63 = vpop.f32.mrf.mxu3 }
  0xda   : > { %v930_v1 = vadd.f32 %v929_v63, %v916_v62 }
  0xe8   : > { %v941_v59 = vpop.f32.mrf.mxu0 }
  0xe9   : > { %v942_v2 = vadd.f32 %v941_v59, %v928_v0 }
  0xeb   : > { %v958_v5 = vmul.f32 %v942_v2, %v942_v2 }
  0xf0   : > { %v943_v3 = vpop.f32.mrf.mxu0 }
  0xf1   : > { %v944_v4 = vadd.f32 %v943_v3, %v930_v1 }
  0xf3   : > { %v1475_v6 = vpack.c.bf16 %v944_v4, %v942_v2  ;;  %v950_v7 = vadd.f32 %v944_v4, %v942_v2  ;;  %v959_v8 = vmul.f32 %v944_v4, %v944_v4 }
  0xf5   : > { %1476 = vst [vmem:[%s182_s23] sm:$0xff] %v1475_v6   ;;  %v951_v9 = vrot.slane %v950_v7, 4  ;;  %v960_v10 = vadd.f32 %v959_v8, %v958_v5 }
  0xf7   : > { %v952_v11 = vadd.f32 %v951_v9, %v950_v7  ;;  %v961_v12 = vrot.slane %v960_v10, 4 }
  0xf9   : > { %v953_v13 = vrot.slane %v952_v11, 2  ;;  %v962_v14 = vadd.f32 %v961_v12, %v960_v10 }
  0xfb   : > { %v954_v15 = vadd.f32 %v953_v13, %v952_v11  ;;  %v963_v16 = vrot.slane %v962_v14, 2 }
  0xfd   : > { %v955_v17 = vrot.slane %v954_v15, 1  ;;  %v964_v18 = vadd.f32 %v963_v16, %v962_v14 }
  0xff   : > { %v956_v19 = vadd.f32 %v955_v17, %v954_v15  ;;  %v965_v20 = vrot.slane %v964_v18, 1 }
 0x101   : > { %957 = vst [vmem:[%s187_s27] sm:$0x1] %v956_v19  ;;  %v966_v21 = vadd.f32 %v965_v20, %v964_v18 }
 0x103   : > { %967 = vst [vmem:[%s187_s27 + $0x1] sm:$0x1] %v966_v21 }
 0x104 PF: > { %s14_s12 = sadd.s32 1, %s1492_s12  }
 0x105   : > { %p11_p5 = scmp.ge.s32.totalorder %s14_s12, 4  }
 0x107   :  { %13 = sbr.rel (!%p11_p5) target bundleno = 1 (0x1), region = 70 }

// kernel: _lambda_.22
= control target key start
LH: loop header
LB: loop body
LE: loop exit
PB: predicated region body
PF: predicated region fallthrough
CT: control target
= control target key end

     0   :  { %s478_s12 = smov 0   ;;  %s527_s0 = inlined_call_operand.vmem [shape: bf16[32,128], index: 0, kind: input, shape index: {}]   ;;  %s528_s1 = inlined_call_operand.vmem [shape: bf16[128,128], index: 1, kind: input, shape index: {}]   ;;  %s529_s2 = inlined_call_operand.vmem [shape: bf16[32,128], index: 2, kind: output, shape index: {0}]   ;;  %s530_s3 = inlined_call_operand.vmem [shape: f32[2,2,128], index: 3, kind: output, shape index: {1}]  }
   0x1 LB: > { %s484_s13 = sadd.s32 4294967295, %s456_s12   ;;  %p384_p0 = scmp.ge.s32.totalorder %s456_s12, 1  ;;  %s456_s12 = sphi %s478_s12, %s14_s12  }
   0x2   : > { %p141_p1 = scmp.lt.s32.totalorder %s456_s12, 3 }
   0x4   : > { %p142_p2 = pnand %p384_p0, %p141_p1 }
   0x5   : > { %s385_s22 = sshll.u32 (!%p142_p2), %s484_s13, 1  ;;  %p181_p4 = scmp.lt.s32.totalorder (!%p142_p2), %s484_s13, 1 }
   0x6   : > { %145 = sbr.rel (%p142_p2) target bundleno = 194 (0xc2), region = 28  ;;  %p170_p3 = scmp.lt.s32.totalorder (!%p142_p2), %s385_s22, 3 }
   0xb   : > { %v436_v0 = vld [vmem:[%s528_s1 + $0x38] sm:$0xff]  ;;  %v435_v1 = vld [vmem:[%s528_s1 + $0x30] sm:$0xff]  ;;  %v434_v2 = vld [vmem:[%s528_s1 + $0x28] sm:$0xff]  ;;  %s532_s22 = smov (!%p170_p3, %s385_s22), 3  ;;  %s534_s13 = smov (!%p181_p4, %s484_s13), 1 }
   0xc   : > { %257 = vmatpush.bf16.msra.mxu0 %v436_v0  ;;  %v433_v3 = vld [vmem:[%s528_s1 + $0x20] sm:$0xff]  ;;  %v432_v4 = vld [vmem:[%s528_s1 + $0x18] sm:$0xff]  ;;  %v431_v5 = vld [vmem:[%s528_s1 + $0x10] sm:$0xff]  ;;  %s386_s29 = sshll.u32 %s532_s22, 2  ;;  %s389_s11 = sshll.u32 %s534_s13, 1 }
   0xd   : > { %v430_v6 = vld [vmem:[%s528_s1 + $0x8] sm:$0xff]  ;;  %v429_v7 = vld [vmem:[%s528_s1] sm:$0xff]  ;;  %s173_s7 = scalar_lea.vmem %s527_s0, %s386_s29  ;;  %s179_s10 = scalar_lea.vmem %s529_s2, %s386_s29 }
   0xe   : > { %v428_v8 = vld [vmem:[%s173_s7] sm:$0xff]  ;;  %s184_s16 = scalar_lea.vmem %s530_s3, %s389_s11 }
  0x10   : > { %258 = vmatpush.bf16.msra.mxu0 %v435_v1 }
  0x14   : > { %259 = vmatpush.bf16.msra.mxu0 %v434_v2 }
  0x18   : > { %260 = vmatpush.bf16.msra.mxu0 %v433_v3 }
  0x1c   : > { %261 = vmatpush.bf16.msra.mxu0 %v432_v4 }
  0x20   : > { %262 = vmatpush.bf16.msra.mxu0 %v431_v5 }
  0x24   : > { %263 = vmatpush.bf16.msra.mxu0 %v430_v6 }
  0x28   : > { %264 = vmatpush.bf16.msra.mxu0 %v429_v7 }
  0x2b   : > { %265 = vmatmul.bf16.vlgmr.msra.gmra.mxu0 %v428_v8 }
  0xa8   : > { %v266_v9 = vpop.f32.mrf.mxu0 }
  0xa9   : > { %v283_v11 = vmul.f32 %v266_v9, %v266_v9 }
  0xb0   : > { %v268_v10 = vpop.f32.mrf.mxu0 }
  0xb1   : > { %v440_v12 = vpack.c.bf16 %v268_v10, %v266_v9  ;;  %v275_v13 = vadd.f32 %v268_v10, %v266_v9  ;;  %v284_v14 = vmul.f32 %v268_v10, %v268_v10 }
  0xb3   : > { %441 = vst [vmem:[%s179_s10] sm:$0xff] %v440_v12   ;;  %v276_v15 = vrot.slane %v275_v13, 4  ;;  %v285_v16 = vadd.f32 %v284_v14, %v283_v11 }
  0xb5   : > { %v277_v17 = vadd.f32 %v276_v15, %v275_v13  ;;  %v286_v18 = vrot.slane %v285_v16, 4 }
  0xb7   : > { %v278_v19 = vrot.slane %v277_v17, 2  ;;  %v287_v20 = vadd.f32 %v286_v18, %v285_v16 }
  0xb9   : > { %v279_v21 = vadd.f32 %v278_v19, %v277_v17  ;;  %v288_v22 = vrot.slane %v287_v20, 2 }
  0xbb   : > { %v280_v23 = vrot.slane %v279_v21, 1  ;;  %v289_v24 = vadd.f32 %v288_v22, %v287_v20 }
  0xbd   : > { %v281_v25 = vadd.f32 %v280_v23, %v279_v21  ;;  %v290_v26 = vrot.slane %v289_v24, 1 }
  0xbf   : > { %282 = vst [vmem:[%s184_s16] sm:$0x1] %v281_v25  ;;  %v291_v27 = vadd.f32 %v290_v26, %v289_v24 }
  0xc1   : > { %292 = vst [vmem:[%s184_s16 + $0x1] sm:$0x1] %v291_v27 }
  0xc2 PF: > { %s14_s12 = sadd.s32 1, %s456_s12  }
  0xc3   : > { %p11_p5 = scmp.ge.s32.totalorder %s14_s12, 4  }
  0xc5   :  { %13 = sbr.rel (!%p11_p5) target bundleno = 1 (0x1), region = 70 }

// kernel: _lambda_.23
= control target key start
LH: loop header
LB: loop body
LE: loop exit
PB: predicated region body
PF: predicated region fallthrough
CT: control target
= control target key end

     0   :  { %8 = vsyncpa [#allocation3], 0  ;;  %s563_s0 = inlined_call_operand.vmem [shape: bf16[2,16,128], index: 0, kind: input, shape index: {}]   ;;  %s564_s1 = inlined_call_operand.vmem [shape: bf16[2,16,128], index: 1, kind: input, shape index: {}]   ;;  %s565_s2 = inlined_call_operand.vmem [shape: f32[4,128], index: 2, kind: input, shape index: {}]   ;;  %s566_s3 = inlined_call_operand.hbm [shape: f32[2,1,128], index: 3, kind: output, shape index: {}]  }
   0x1   :  { %10 = vsyncpa [#allocation3 + $0x1], 0  ;;  %s463_s12 = smov 0   ;;  %s465_s13 = smov 0  }
   0x2   :  { %s467_s14 = smov 0   ;;  %s469_s15 = smov 0  }
   0x3 LB: > { %s484_s16 = sadd.s32 4294967295, %s440_s15   ;;  %s312_s17 = sadd.s32 4294967294, %s440_s15   ;;  %s440_s15 = sphi %s469_s15, %s572_s15   ;;  %s436_s14 = sphi %s467_s14, %s571_s14   ;;  %s432_s13 = sphi %s465_s13, %s570_s13   ;;  %s428_s12 = sphi %s463_s12, %s569_s12  }
   0x4   : > { %s488_s18 = sadd.s32 1, %s440_s15   ;;  %s96_s19 = sadd.s32 1, %s436_s14 }
   0x5   : > { %s93_s20 = ssub.s32 %s440_s15, %s488_s18  ;;  %p106_p0 = scmp.ne.s32.totalorder %s436_s14, %s432_s13 }
   0x6   : > { %p94_p1 = scmp.eq.s32.totalorder %s93_s20, 0  ;;  %p107_p2 = scmp.eq.s32.totalorder %s484_s16, 1 }
   0x7   : > { %p112_p3 = scmp.ne.s32.totalorder %s432_s13, %s428_s12  ;;  %p113_p4 = scmp.eq.s32.totalorder %s312_s17, 1 }
   0x8   : > { %s499_s21 = scalar_select %p94_p1, %s436_s14, %s96_s19  }
   0x9   : > { %p501_p5 = por %p107_p2, %p106_p0  ;;  %p505_p6 = por %p113_p4, %p112_p3 }
   0xa   : > { %p315_p7 = scmp.ge.s32.totalorder %s440_s15, 1  ;;  %p150_p8 = scmp.lt.s32.totalorder %s440_s15, 3 }
   0xc   : > { %p151_p9 = pnand %p315_p7, %p150_p8 }
   0xd   : > { %p178_p10 = scmp.lt.s32.totalorder (!%p151_p9), %s484_s16, 1  ;;  %s176_s19 = sand.u32 (!%p151_p9), 1, %s432_s13  }
   0xe   : > { %154 = sbr.rel (%p151_p9) target bundleno = 55 (0x37), region = 32  ;;  %s177_s26 = scalar_lea.vmem (!%p151_p9), [#allocation2], %s176_s19 }
   0xf   : > { %s243_s27 = sshll.u32 (!%p151_p9), %s177_s26, 4  ;;  %s233_s29 = scalar_lea.sflag (!%p151_p9), [#allocation3], %s176_s19  ;;  %s244_s27 = int_to_ptr.vmem [resolvable:$true] %s243_s27 }
  0x10   : > { %s398_s6 = scalar_lea.hbm (!%p151_p9), %s566_s3, 2 }
  0x13   : > { %s179_s24 = scalar_select %p178_p10, %s484_s16, 1  ;;  %v372_v0 = vld [vmem:[%s565_s2] ss:$0 sm:$0xff]  ;;  %v374_v1 = vld [vmem:[%s565_s2 + $0x2] ss:$0 sm:$0xff]  ;;  %v442_v2 = vmov 16.0  }
  0x14   : > { %376 = vrcp.f32 %v442_v2  ;;  %v373_v9 = vld [vmem:[%s565_s2 + $0x1] ss:$0 sm:$0xff]  ;;  %v375_v17 = vld [vmem:[%s565_s2 + $0x3] ss:$0 sm:$0xff] }
  0x15   : > { %s322_s25 = sshll.u32 %s179_s24, 3 }
  0x16   : > { %s182_s28 = scalar_lea.vmem %s563_s0, %s322_s25  ;;  %s187_s4 = scalar_lea.vmem %s564_s1, %s322_s25 }
  0x17   : > { %v325_v3 = vld [vmem:[%s182_s28] sm:$0xff]   ;;  %s241_s25 = scalar_lea.hbm %s566_s3, %s484_s16 }
  0x18   : > { %v329_v4 = vld [vmem:[%s187_s4] sm:$0xff]   ;;  %v326_v5 = vunpack.c.l.bf16 %v325_v3  ;;  %v327_v6 = vunpack.c.h.bf16 %v325_v3  ;;  %s245_s28 = sshll.u32 %s241_s25, 4  ;;  %s246_s28 = int_to_ptr.hbm [resolvable:$true] %s245_s28 }
  0x19   : > { %v330_v7 = vunpack.c.l.bf16 %v329_v4  ;;  %v331_v8 = vunpack.c.h.bf16 %v329_v4  ;;  %s392_s30 = sshra.s32 %s246_s28, 4  ;;  %s393_s30 = int_to_ptr.hbm [resolvable:$true] %s392_s30 }
  0x1a   : > { %v198_v10 = vmul.f32 %v372_v0, %v326_v5  ;;  %v199_v11 = vmul.f32 %v372_v0, %v327_v6  ;;  %v377_v14 = vpop.eup %376  ;;  %s394_s4 = scalar_lea.hbm %s393_s30, 1  ;;  %p399_p0 = scmp.lt.s32.totalorder %s393_s30, %s566_s3 }
  0x1b   : > { %v206_v12 = vmul.f32 %v374_v1, %v330_v7  ;;  %v207_v13 = vmul.f32 %v374_v1, %v331_v8  ;;  %v224_v20 = vmul.f32 16.0, %v377_v14  ;;  %vm228_vm0 = vweird.f32 %v377_v14  ;;  %p395_p11 = scmp.ne.s32.totalorder %s393_s30, %s394_s4  ;;  %p400_p1 = scmp.lt.s32.totalorder %s398_s6, %s394_s4 }
  0x1c   : > { %v202_v15 = vadd.f32 %v373_v9, %v198_v10  ;;  %v203_v16 = vadd.f32 %v373_v9, %v199_v11 }
  0x1d   : > { %v225_v25 = vsub.f32 1.0, %v224_v20  ;;  %p396_p12 = pnand %p395_p11, %p501_p5  ;;  %p401_p2 = por %p400_p1, %p399_p0 }
  0x1e   : > { %v208_v18 = vadd.f32 %v206_v12, %v202_v15  ;;  %v209_v19 = vadd.f32 %v207_v13, %v203_v16 }
  0x1f   : > { %v226_v28 = vmul.f32 %v377_v14, %v225_v25  ;;  %p397_p13 = pneg %p396_p12 }
  0x20   : > { %v212_v21 = vadd.f32 %v375_v17, %v208_v18  ;;  %v213_v22 = vadd.f32 %v375_v17, %v209_v19 }
  0x21   : > { %v227_v31 = vadd.f32 %v377_v14, %v226_v28  ;;  %p402_p3 = pnand %p401_p2, %p397_p13 }
  0x22   : > { %v214_v23 = vmax.f32 %v212_v21, 0.0  ;;  %v215_v24 = vmax.f32 %v213_v22, 0.0 }
  0x23   : > { %v229_v34 = vsel %vm228_vm0, %v377_v14, %v227_v31 }
  0x24   : > { %v216_v26 = vadd.f32 %v215_v24, %v214_v23 }
  0x26   : > { %v217_v27 = vrot.slane %v216_v26, 4 }
  0x28   : > { %v218_v29 = vadd.f32 %v217_v27, %v216_v26 }
  0x2a   : > { %v219_v30 = vrot.slane %v218_v29, 2 }
  0x2c   : > { %v220_v32 = vadd.f32 %v219_v30, %v218_v29 }
  0x2e   : > { %v221_v33 = vrot.slane %v220_v32, 1 }
  0x30   : > { %v222_v35 = vadd.f32 %v221_v33, %v220_v32 }
  0x32   : > { %v230_v36 = vmul.f32 %v229_v34, %v222_v35 }
  0x34   : > { %231 = vst [vmem:[%s177_s26] sm:$0x1] %v230_v36 }
  0x35   : > { %405 = shalt.err (!%p402_p3)
}
  0x36   : > { %332 = dma.vmem_to_hbm [thread:$0]  (%p501_p5), %s244_s27, 16, %s246_s28, %s233_s29  }
  0x37 PF: > { %p338_p4 = scmp.ge.s32.totalorder %s440_s15, 2  ;;  %s257_s9 = sand.u32 1, %s428_s12  }
  0x38   : > { %s258_s10 = scalar_lea.sflag [#allocation3], %s257_s9 }
  0x39   : > { %p335_p7 = pnand %p338_p4, %p505_p6 }
  0x3b   : > { %p336_p8 = pneg %p335_p7 }
  0x3d   : > { %423 = dma.done.wait (%p336_p8), %s258_s10, 16  }
  0x3e   : > { %425 = vsyncadd (%p336_p8), %s258_s10, 4294967280  ;;  %p13_p9 = scmp.ge.s32.totalorder %s488_s18, 4   ;;  %s569_s12 = smov %s432_s13 }
  0x3f   : > { %s570_s13 = smov %s436_s14  ;;  %s571_s14 = smov %s499_s21 }
  0x40   : > { %s572_s15 = smov %s488_s18  ;;  %15 = sbr.rel (!%p13_p9) target bundleno = 3 (0x3), region = 70 }
  0x45   :  { %263 = vsyncpa [#allocation3], 1 }
  0x46   :  { %265 = vsyncpa [#allocation3 + $0x1], 1 }

</bundles_post_ra>
